<compile_context>
chip_gen: v6e
topology: v6e:2x2x1
jax: 0.10.0
libtpu: 0.0.40
codegen_flags: <defaults>
</compile_context>

<pallas_src>
import jax
import jax.numpy as jnp
from jax.experimental import pallas as pl
from jax.experimental.pallas import tpu as pltpu


def top_encoder_kernel(x_ref,
                       w1_ref, b1_ref,
                       w2_ref, b2_ref,
                       w3_ref, b3_ref,
                       wh_ref, bh_ref,
                       out_ref):
    cdt = w1_ref.dtype  # matmul-operand dtype (f32, or bf16 on the fast path)
    # fc1 + ReLU
    h = jnp.dot(x_ref[...].astype(cdt), w1_ref[...],
                preferred_element_type=jnp.float32)
    h = jnp.maximum(h + b1_ref[...], 0.0)
    # fc2 + ReLU
    h = jnp.dot(h.astype(cdt), w2_ref[...], preferred_element_type=jnp.float32)
    h = jnp.maximum(h + b2_ref[...], 0.0)
    # fc3 + ReLU
    h = jnp.dot(h.astype(cdt), w3_ref[...], preferred_element_type=jnp.float32)
    h = jnp.maximum(h + b3_ref[...], 0.0)
    # fused heads: fc31 (mu) | fc32 (logvar) | zero padding, one lane-dense store
    out = jnp.dot(h.astype(cdt), wh_ref[...],
                  preferred_element_type=jnp.float32) + bh_ref[...]
    out_ref[...] = out.astype(out_ref.dtype)


def _round_up(n, m):
    return ((n + m - 1) // m) * m


def top_encoder_forward(x, params, *, batch_tile=256, weights_dtype=None):
    """x: (B, input_dim) float32. params: dict of transposed weights/biases.

    weights_dtype=None keeps f32 weights (bit-accurate vs. the reference);
    weights_dtype=jnp.bfloat16 halves weight VMEM and uses the bf16 MXU path
    (f32 accumulation) — the recommended setting on v6e/v7x.
    """
    B, input_dim = x.shape
    hidden = params["w1"].shape[1]          # 512
    latent = params["w31"].shape[1]

    # ---- fuse mu/logvar heads into one (hidden, head_n) matmul, zero-padded to
    #      a 128-lane multiple so the output block is stored unmasked.
    head_n = _round_up(max(2 * latent, 128), 128)
    wh = jnp.zeros((hidden, head_n), jnp.float32)
    wh = wh.at[:, :latent].set(params["w31"])
    wh = wh.at[:, latent:2 * latent].set(params["w32"])
    bh = jnp.zeros((1, head_n), jnp.float32)
    bh = bh.at[:, :latent].set(params["b31"])
    bh = bh.at[:, latent:2 * latent].set(params["b32"])

    w1, w2, w3 = params["w1"], params["w2"], params["w3"]
    b1, b2, b3 = params["b1"], params["b2"], params["b3"]
    if weights_dtype is not None:
        w1, w2, w3, wh = (w.astype(weights_dtype) for w in (w1, w2, w3, wh))

    # ---- batch tiling: fill the MXU M dimension; keep >=2 grid steps when
    #      possible (v7x has 2 TensorCores); pad ragged batches to tile multiple.
    tile = _round_up(min(batch_tile, _round_up(B, 8)), 8)
    if _round_up(B, tile) == tile and tile >= 16 and (tile // 2) % 8 == 0:
        tile //= 2                      # grid of 1 -> grid of 2
    B_pad = _round_up(B, tile)
    x_in = x if B_pad == B else jnp.zeros((B_pad, input_dim), x.dtype).at[:B].set(x)
    grid = (B_pad // tile,)

    full = lambda shape: pl.BlockSpec(shape, lambda i: (0, 0))
    row = lambda dim: pl.BlockSpec((tile, dim), lambda i: (i, 0))

    grid_spec = pltpu.PrefetchScalarGridSpec(
        num_scalar_prefetch=0,
        grid=grid,
        in_specs=[
            row(input_dim),                                   # x tile
            full((input_dim, hidden)), full((1, hidden)),     # fc1
            full((hidden, hidden)),    full((1, hidden)),     # fc2
            full((hidden, hidden)),    full((1, hidden)),     # fc3
            full((hidden, head_n)),    full((1, head_n)),     # fused fc31|fc32
        ],
        out_specs=row(head_n),
    )

    nbytes = lambda a: a.size * a.dtype.itemsize
    flops = 2 * B_pad * (input_dim * hidden + 2 * hidden * hidden + hidden * head_n)
    bytes_accessed = (nbytes(x_in) + B_pad * head_n * 4
                      + sum(nbytes(a) for a in (w1, b1, w2, b2, w3, b3, wh, bh)))

    out = pl.pallas_call(
        top_encoder_kernel,
        out_shape=jax.ShapeDtypeStruct((B_pad, head_n), jnp.float32),
        grid_spec=grid_spec,
        compiler_params=pltpu.CompilerParams(
            dimension_semantics=("parallel",)),
        cost_estimate=pl.CostEstimate(
            flops=flops, transcendentals=0, bytes_accessed=bytes_accessed),
    )(x_in, w1, b1, w2, b2, w3, b3, wh, bh)

    mu = out[:B, :latent]
    logvar = out[:B, latent:2 * latent]
    return mu, logvar


def init_params(key, input_dim, latent_dim, hidden=512):
    """Deterministic init mimicking nn.Linear's U(-1/sqrt(fan_in), 1/sqrt(fan_in)).
    Weights returned already transposed to (in_features, out_features)."""
    def linear(k, fan_in, fan_out):
        kw, kb = jax.random.split(k)
        bound = 1.0 / jnp.sqrt(fan_in)
        w = jax.random.uniform(kw, (fan_in, fan_out), jnp.float32, -bound, bound)
        b = jax.random.uniform(kb, (1, fan_out), jnp.float32, -bound, bound)
        return w, b

    ks = jax.random.split(key, 5)
    w1, b1 = linear(ks[0], input_dim, hidden)
    w2, b2 = linear(ks[1], hidden, hidden)
    w3, b3 = linear(ks[2], hidden, hidden)
    w31, b31 = linear(ks[3], hidden, latent_dim)
    w32, b32 = linear(ks[4], hidden, latent_dim)
    return dict(w1=w1, b1=b1, w2=w2, b2=b2, w3=w3, b3=b3,
                w31=w31, b31=b31, w32=w32, b32=b32)


def reference_forward(x, p):
    relu = lambda t: jnp.maximum(t, 0.0)
    h = relu(x @ p["w1"] + p["b1"])
    h = relu(h @ p["w2"] + p["b2"])
    h = relu(h @ p["w3"] + p["b3"])
    return h @ p["w31"] + p["b31"], h @ p["w32"] + p["b32"]


if __name__ == "__main__":
    key = jax.random.PRNGKey(0)
    k_x, k_p = jax.random.split(key)

    input_dim, latent_dim = 64, 32
    params = init_params(k_p, input_dim, latent_dim)

    # 1) small baseline batch, f32 weights (bit-accurate path)
    x_small = jax.random.normal(k_x, (8, input_dim), jnp.float32)
    mu, logvar = top_encoder_forward(x_small, params)
    jax.block_until_ready((mu, logvar))
    mu_ref, lv_ref = reference_forward(x_small, params)
    assert mu.shape == (8, latent_dim) and logvar.shape == (8, latent_dim)
    assert jnp.allclose(mu, mu_ref, atol=1e-4, rtol=1e-4)
    assert jnp.allclose(logvar, lv_ref, atol=1e-4, rtol=1e-4)

    # 2) ragged batch: exercises zero-padding + multi-step grid, f32 weights
    x_rag = jax.random.normal(jax.random.PRNGKey(1), (44, input_dim), jnp.float32)
    mu, logvar = top_encoder_forward(x_rag, params)
    jax.block_until_ready((mu, logvar))
    mu_ref, lv_ref = reference_forward(x_rag, params)
    assert mu.shape == (44, latent_dim) and logvar.shape == (44, latent_dim)
    assert jnp.allclose(mu, mu_ref, atol=1e-4, rtol=1e-4)
    assert jnp.allclose(logvar, lv_ref, atol=1e-4, rtol=1e-4)

    # 3) bf16 weights, f32 accumulation (v6e/v7x fast path), looser tolerance
    mu_b, lv_b = top_encoder_forward(x_rag, params, weights_dtype=jnp.bfloat16)
    jax.block_until_ready((mu_b, lv_b))
    assert jnp.allclose(mu_b, mu_ref, atol=5e-2, rtol=5e-2)
    assert jnp.allclose(lv_b, lv_ref, atol=5e-2, rtol=5e-2)

    print("KERNEL_OK")
</pallas_src>

<mosaic_0001>
module attributes {stable_mosaic.version = 11 : i64} {
  func.func @top_encoder_kernel(%arg0: i32, %arg1: memref<8x64xf32, #tpu.memory_space<vmem>>, %arg2: memref<64x512xf32, #tpu.memory_space<vmem>>, %arg3: memref<1x512xf32, #tpu.memory_space<vmem>>, %arg4: memref<512x512xf32, #tpu.memory_space<vmem>>, %arg5: memref<1x512xf32, #tpu.memory_space<vmem>>, %arg6: memref<512x512xf32, #tpu.memory_space<vmem>>, %arg7: memref<1x512xf32, #tpu.memory_space<vmem>>, %arg8: memref<512x128xf32, #tpu.memory_space<vmem>>, %arg9: memref<1x128xf32, #tpu.memory_space<vmem>>, %arg10: memref<8x128xf32, #tpu.memory_space<vmem>>) attributes {dimension_semantics = [#tpu.dimension_semantics<parallel>], iteration_bounds = array<i64: 1>, scalar_prefetch = 0 : i64, scratch_operands = 0 : i64, tpu.core_type = #tpu.core_type<tc>, window_params = [{transform_indices = @transform_0, window_bounds = array<i64: 8, 64>}, {pipeline_mode = #tpu.pipeline_mode<synchronous>, transform_indices = @transform_1, window_bounds = array<i64: 64, 512>}, {pipeline_mode = #tpu.pipeline_mode<synchronous>, transform_indices = @transform_2, window_bounds = array<i64: 1, 512>}, {pipeline_mode = #tpu.pipeline_mode<synchronous>, transform_indices = @transform_3, window_bounds = array<i64: 512, 512>}, {pipeline_mode = #tpu.pipeline_mode<synchronous>, transform_indices = @transform_4, window_bounds = array<i64: 1, 512>}, {pipeline_mode = #tpu.pipeline_mode<synchronous>, transform_indices = @transform_5, window_bounds = array<i64: 512, 512>}, {pipeline_mode = #tpu.pipeline_mode<synchronous>, transform_indices = @transform_6, window_bounds = array<i64: 1, 512>}, {pipeline_mode = #tpu.pipeline_mode<synchronous>, transform_indices = @transform_7, window_bounds = array<i64: 512, 128>}, {pipeline_mode = #tpu.pipeline_mode<synchronous>, transform_indices = @transform_8, window_bounds = array<i64: 1, 128>}, {transform_indices = @transform_9, window_bounds = array<i64: 8, 128>}]} {
    %c0 = arith.constant 0 : index
    %c0_0 = arith.constant 0 : index
    %0 = vector.load %arg1[%c0, %c0_0] : memref<8x64xf32, #tpu.memory_space<vmem>>, vector<8x64xf32>
    %c0_1 = arith.constant 0 : index
    %c0_2 = arith.constant 0 : index
    %1 = vector.load %arg2[%c0_1, %c0_2] : memref<64x512xf32, #tpu.memory_space<vmem>>, vector<64x512xf32>
    %cst = arith.constant dense<0.000000e+00> : vector<8x512xf32>
    %2 = tpu.matmul %0, %1, %cst {dimension_numbers = #tpu.dot_dimension_numbers<[1], [0], [0], [1], [0, 0, 1, 1], [], []>} : vector<8x64xf32>, vector<64x512xf32>, vector<8x512xf32> -> vector<8x512xf32>
    %c0_3 = arith.constant 0 : index
    %c0_4 = arith.constant 0 : index
    %3 = vector.load %arg3[%c0_3, %c0_4] : memref<1x512xf32, #tpu.memory_space<vmem>>, vector<1x512xf32>
    %4 = vector.broadcast %3 : vector<1x512xf32> to vector<8x512xf32>
    %5 = arith.addf %2, %4 : vector<8x512xf32>
    %cst_5 = arith.constant 0.000000e+00 : f32
    %6 = vector.broadcast %cst_5 : f32 to vector<8x512xf32>
    %7 = arith.maximumf %5, %6 : vector<8x512xf32>
    %c0_6 = arith.constant 0 : index
    %c0_7 = arith.constant 0 : index
    %8 = vector.load %arg4[%c0_6, %c0_7] : memref<512x512xf32, #tpu.memory_space<vmem>>, vector<512x512xf32>
    %cst_8 = arith.constant dense<0.000000e+00> : vector<8x512xf32>
    %9 = tpu.matmul %7, %8, %cst_8 {dimension_numbers = #tpu.dot_dimension_numbers<[1], [0], [0], [1], [0, 0, 1, 1], [], []>} : vector<8x512xf32>, vector<512x512xf32>, vector<8x512xf32> -> vector<8x512xf32>
    %c0_9 = arith.constant 0 : index
    %c0_10 = arith.constant 0 : index
    %10 = vector.load %arg5[%c0_9, %c0_10] : memref<1x512xf32, #tpu.memory_space<vmem>>, vector<1x512xf32>
    %11 = vector.broadcast %10 : vector<1x512xf32> to vector<8x512xf32>
    %12 = arith.addf %9, %11 : vector<8x512xf32>
    %cst_11 = arith.constant 0.000000e+00 : f32
    %13 = vector.broadcast %cst_11 : f32 to vector<8x512xf32>
    %14 = arith.maximumf %12, %13 : vector<8x512xf32>
    %c0_12 = arith.constant 0 : index
    %c0_13 = arith.constant 0 : index
    %15 = vector.load %arg6[%c0_12, %c0_13] : memref<512x512xf32, #tpu.memory_space<vmem>>, vector<512x512xf32>
    %cst_14 = arith.constant dense<0.000000e+00> : vector<8x512xf32>
    %16 = tpu.matmul %14, %15, %cst_14 {dimension_numbers = #tpu.dot_dimension_numbers<[1], [0], [0], [1], [0, 0, 1, 1], [], []>} : vector<8x512xf32>, vector<512x512xf32>, vector<8x512xf32> -> vector<8x512xf32>
    %c0_15 = arith.constant 0 : index
    %c0_16 = arith.constant 0 : index
    %17 = vector.load %arg7[%c0_15, %c0_16] : memref<1x512xf32, #tpu.memory_space<vmem>>, vector<1x512xf32>
    %18 = vector.broadcast %17 : vector<1x512xf32> to vector<8x512xf32>
    %19 = arith.addf %16, %18 : vector<8x512xf32>
    %cst_17 = arith.constant 0.000000e+00 : f32
    %20 = vector.broadcast %cst_17 : f32 to vector<8x512xf32>
    %21 = arith.maximumf %19, %20 : vector<8x512xf32>
    %c0_18 = arith.constant 0 : index
    %c0_19 = arith.constant 0 : index
    %22 = vector.load %arg8[%c0_18, %c0_19] : memref<512x128xf32, #tpu.memory_space<vmem>>, vector<512x128xf32>
    %cst_20 = arith.constant dense<0.000000e+00> : vector<8x128xf32>
    %23 = tpu.matmul %21, %22, %cst_20 {dimension_numbers = #tpu.dot_dimension_numbers<[1], [0], [0], [1], [0, 0, 1, 1], [], []>} : vector<8x512xf32>, vector<512x128xf32>, vector<8x128xf32> -> vector<8x128xf32>
    %c0_21 = arith.constant 0 : index
    %c0_22 = arith.constant 0 : index
    %24 = vector.load %arg9[%c0_21, %c0_22] : memref<1x128xf32, #tpu.memory_space<vmem>>, vector<1x128xf32>
    %25 = vector.broadcast %24 : vector<1x128xf32> to vector<8x128xf32>
    %26 = arith.addf %23, %25 : vector<8x128xf32>
    %c0_23 = arith.constant 0 : index
    %c0_24 = arith.constant 0 : index
    %27 = vector.load %arg10[%c0_23, %c0_24] : memref<8x128xf32, #tpu.memory_space<vmem>>, vector<8x128xf32>
    tpu.vector_store %arg10[%c0_23, %c0_24], %26 {strides = array<i32>} : memref<8x128xf32, #tpu.memory_space<vmem>>, vector<8x128xf32>,
    return
  }
  func.func @transform_0(%arg0: i32) -> (i32, i32) {
    %c0_i32 = arith.constant 0 : i32
    %c0_i32_0 = arith.constant 0 : i32
    return %arg0, %c0_i32 : i32, i32
  }
  func.func @transform_1(%arg0: i32) -> (i32, i32) {
    %c0_i32 = arith.constant 0 : i32
    %c0_i32_0 = arith.constant 0 : i32
    %c0_i32_1 = arith.constant 0 : i32
    return %c0_i32, %c0_i32_0 : i32, i32
  }
  func.func @transform_2(%arg0: i32) -> (i32, i32) {
    %c0_i32 = arith.constant 0 : i32
    %c0_i32_0 = arith.constant 0 : i32
    %c0_i32_1 = arith.constant 0 : i32
    return %c0_i32, %c0_i32_0 : i32, i32
  }
  func.func @transform_3(%arg0: i32) -> (i32, i32) {
    %c0_i32 = arith.constant 0 : i32
    %c0_i32_0 = arith.constant 0 : i32
    %c0_i32_1 = arith.constant 0 : i32
    return %c0_i32, %c0_i32_0 : i32, i32
  }
  func.func @transform_4(%arg0: i32) -> (i32, i32) {
    %c0_i32 = arith.constant 0 : i32
    %c0_i32_0 = arith.constant 0 : i32
    %c0_i32_1 = arith.constant 0 : i32
    return %c0_i32, %c0_i32_0 : i32, i32
  }
  func.func @transform_5(%arg0: i32) -> (i32, i32) {
    %c0_i32 = arith.constant 0 : i32
    %c0_i32_0 = arith.constant 0 : i32
    %c0_i32_1 = arith.constant 0 : i32
    return %c0_i32, %c0_i32_0 : i32, i32
  }
  func.func @transform_6(%arg0: i32) -> (i32, i32) {
    %c0_i32 = arith.constant 0 : i32
    %c0_i32_0 = arith.constant 0 : i32
    %c0_i32_1 = arith.constant 0 : i32
    return %c0_i32, %c0_i32_0 : i32, i32
  }
  func.func @transform_7(%arg0: i32) -> (i32, i32) {
    %c0_i32 = arith.constant 0 : i32
    %c0_i32_0 = arith.constant 0 : i32
    %c0_i32_1 = arith.constant 0 : i32
    return %c0_i32, %c0_i32_0 : i32, i32
  }
  func.func @transform_8(%arg0: i32) -> (i32, i32) {
    %c0_i32 = arith.constant 0 : i32
    %c0_i32_0 = arith.constant 0 : i32
    %c0_i32_1 = arith.constant 0 : i32
    return %c0_i32, %c0_i32_0 : i32, i32
  }
  func.func @transform_9(%arg0: i32) -> (i32, i32) {
    %c0_i32 = arith.constant 0 : i32
    %c0_i32_0 = arith.constant 0 : i32
    return %arg0, %c0_i32 : i32, i32
  }
}

</mosaic_0001>

<bundles_post_ra>
// kernel: tpu_custom_call.1
= control target key start
LH: loop header
LB: loop body
LE: loop exit
PB: predicated region body
PF: predicated region fallthrough
CT: control target
= control target key end

     0   :  { %14 = vsyncpa [#allocation3], 0  ;;  %s2068_s0 = inlined_call_operand.hbm [shape: f32[8,64], index: 0, kind: input, shape index: {}]   ;;  %s2069_s1 = inlined_call_operand.hbm [shape: f32[64,512], index: 1, kind: input, shape index: {}]   ;;  %s2070_s2 = inlined_call_operand.hbm [shape: f32[1,512], index: 2, kind: input, shape index: {}]   ;;  %s2071_s3 = inlined_call_operand.hbm [shape: f32[512,512], index: 3, kind: input, shape index: {}]   ;;  %s2072_s4 = inlined_call_operand.vmem [shape: f32[1,512], index: 4, kind: input, shape index: {}]   ;;  %s2073_s5 = inlined_call_operand.hbm [shape: f32[512,512], index: 5, kind: input, shape index: {}]   ;;  %s2074_s6 = inlined_call_operand.vmem [shape: f32[1,512], index: 6, kind: input, shape index: {}]   ;;  %s2075_s7 = inlined_call_operand.hbm [shape: f32[512,128], index: 7, kind: input, shape index: {}]   ;;  %s2076_s8 = inlined_call_operand.vmem [shape: f32[1,128], index: 8, kind: input, shape index: {}]   ;;  %s2077_s9 = inlined_call_operand.hbm [shape: f32[8,128], index: 9, kind: output, shape index: {}]  }
   0x1   :  { %15 = vsyncpa [#allocation6], 0 }
   0x2   :  { %16 = vsyncpa [#allocation9], 0 }
   0x3   :  { %17 = vsyncpa [#allocation12], 0 }
   0x4   :  { %18 = vsyncpa [#allocation4], 0  ;;  %s1913_s30 = smov [#allocation5]  }
   0x5   :  { %s34_s10 = sshll.u32 %s1913_s30, 4  ;;  %s35_s10 = int_to_ptr.vmem [resolvable:$true] %s34_s10 }
   0x6   :  { %s1771_s11 = scalar_lea.vmem %s35_s10, 4096  ;;  %p1776_p1 = scmp.lt.s32.totalorder %s35_s10, %s35_s10 }
   0x7   :  { %p1772_p0 = scmp.ne.s32.totalorder %s35_s10, %s1771_s11  ;;  %p1777_p2 = scmp.lt.s32.totalorder %s1771_s11, %s1771_s11 }
   0x9   :  { %p1778_p3 = por %p1777_p2, %p1776_p1 }
   0xb   :  { %p1779_p4 = pnand %p1778_p3, %p1772_p0 }
   0xd   :  { %1782 = shalt.err (!%p1779_p4)
}
   0xe   :  { %s1914_s12 = smov 512   ;;  %s1915_s13 = smov 32  }
   0xf   :  { %40 = dma.hbm_to_vmem [thread:$0]  %s2069_s1, 4096, %s35_s10, [#allocation6], %s1914_s12, %s1914_s12, %s1915_s13  }
  0x10   :  { %s1916_s16 = smov [#allocation8]   ;;  %s1917_s18 = smov [#allocation2]  }
  0x11   :  { %s56_s17 = sshll.u32 %s1916_s16, 4  ;;  %s25_s19 = sshll.u32 %s1917_s18, 4  ;;  %s57_s17 = int_to_ptr.vmem [resolvable:$true] %s56_s17  ;;  %s26_s19 = int_to_ptr.vmem [resolvable:$true] %s25_s19 }
  0x12   :  { %s1791_s20 = scalar_lea.vmem %s57_s17, 32768  ;;  %p1796_p6 = scmp.lt.s32.totalorder %s57_s17, %s57_s17 }
  0x13   :  { %p1792_p5 = scmp.ne.s32.totalorder %s57_s17, %s1791_s20  ;;  %p1797_p7 = scmp.lt.s32.totalorder %s1791_s20, %s1791_s20 }
  0x15   :  { %p1798_p8 = por %p1797_p7, %p1796_p6 }
  0x17   :  { %p1799_p9 = pnand %p1798_p8, %p1792_p5 }
  0x19   :  { %1802 = shalt.err (!%p1799_p9)
}
  0x1a   :  { %62 = dma.hbm_to_vmem [thread:$0]  %s2071_s3, 32768, %s57_s17, [#allocation9], %s1914_s12, %s1914_s12, %s1915_s13  }
  0x1b   :  { %s1811_s1 = scalar_lea.vmem %s26_s19, 128  ;;  %p1816_p11 = scmp.lt.s32.totalorder %s26_s19, %s26_s19 }
  0x1c   :  { %p1812_p10 = scmp.ne.s32.totalorder %s26_s19, %s1811_s1  ;;  %p1817_p12 = scmp.lt.s32.totalorder %s1811_s1, %s1811_s1 }
  0x1e   :  { %p1818_p13 = por %p1817_p12, %p1816_p11 }
  0x20   :  { %p1819_p0 = pnand %p1818_p13, %p1812_p10 }
  0x22   :  { %1822 = shalt.err (!%p1819_p0)
}
  0x23   :  { %28 = dma.hbm_to_vmem [thread:$0]  %s2068_s0, 128, %s26_s19, [#allocation3]  }
  0x24   :  { %s1918_s25 = smov [#allocation7]   ;;  %s1919_s27 = smov [#allocation10]  }
  0x25   :  { %s47_s26 = sshll.u32 %s1918_s25, 4  ;;  %s70_s28 = sshll.u32 %s1919_s27, 4  ;;  %s48_s26 = int_to_ptr.vmem [resolvable:$true] %s47_s26  ;;  %s71_s28 = int_to_ptr.vmem [resolvable:$true] %s70_s28 }
  0x26   :  { %s1831_s29 = scalar_lea.vmem %s48_s26, 64  ;;  %p1836_p2 = scmp.lt.s32.totalorder %s48_s26, %s48_s26 }
  0x27   :  { %p1832_p1 = scmp.ne.s32.totalorder %s48_s26, %s1831_s29  ;;  %p1837_p3 = scmp.lt.s32.totalorder %s1831_s29, %s1831_s29 }
  0x29   :  { %p1838_p4 = por %p1837_p3, %p1836_p2 }
  0x2b   :  { %p1839_p5 = pnand %p1838_p4, %p1832_p1 }
  0x2d   :  { %1842 = shalt.err (!%p1839_p5)
}
  0x2e   :  { %50 = dma.hbm_to_vmem [thread:$0]  %s2070_s2, 64, %s48_s26, [#allocation6]  }
  0x2f   :  { %s1851_s10 = scalar_lea.vmem %s71_s28, 32768  ;;  %p1856_p7 = scmp.lt.s32.totalorder %s71_s28, %s71_s28 }
  0x30   :  { %p1852_p6 = scmp.ne.s32.totalorder %s71_s28, %s1851_s10  ;;  %p1857_p8 = scmp.lt.s32.totalorder %s1851_s10, %s1851_s10 }
  0x32   :  { %p1858_p9 = por %p1857_p8, %p1856_p7 }
  0x34   :  { %p1859_p10 = pnand %p1858_p9, %p1852_p6 }
  0x36   :  { %1862 = shalt.err (!%p1859_p10)
}
  0x37   :  { %76 = dma.hbm_to_vmem [thread:$0]  %s2073_s5, 32768, %s71_s28, [#allocation9], %s1914_s12, %s1914_s12, %s1915_s13  }
  0x38   :  { %s1920_s14 = smov [#allocation11]  }
  0x39   :  { %s84_s15 = sshll.u32 %s1920_s14, 4  ;;  %s85_s15 = int_to_ptr.vmem [resolvable:$true] %s84_s15 }
  0x3a   :  { %s1871_s16 = scalar_lea.vmem %s85_s15, 8192  ;;  %p1876_p12 = scmp.lt.s32.totalorder %s85_s15, %s85_s15 }
  0x3b   :  { %p1872_p11 = scmp.ne.s32.totalorder %s85_s15, %s1871_s16  ;;  %p1877_p13 = scmp.lt.s32.totalorder %s1871_s16, %s1871_s16 }
  0x3d   :  { %p1878_p0 = por %p1877_p13, %p1876_p12 }
  0x3f   :  { %p1879_p1 = pnand %p1878_p0, %p1872_p11 }
  0x41   :  { %1882 = shalt.err (!%p1879_p1)
}
  0x42   :  { %s1921_s2 = smov 128   ;;  %s1922_s17 = smov 8  }
  0x43   :  { %90 = dma.hbm_to_vmem [thread:$0]  %s2075_s7, 8192, %s85_s15, [#allocation12], %s1921_s2, %s1921_s2, %s1922_s17  }
  0x44   :  { %1903 = dma.done.wait [#allocation3], 128  }
  0x45   :  { %1904 = vsyncadd [#allocation3], 4294967168 }
  0x46   :  { %1905 = dma.done.wait [#allocation6], 4160  }
  0x47   :  { %1906 = vsyncadd [#allocation6], 4294963136 }
  0x48   :  { %1907 = dma.done.wait [#allocation9], 65536  }
  0x49   :  { %1908 = vsyncadd [#allocation9], 4294901760 }
  0x4a   :  { %1909 = dma.done.wait [#allocation12], 8192  }
  0x4b   :  { %1910 = vsyncadd [#allocation12], 4294959104  ;;  %v1923_v0 = vmov 0.0   ;;  %v141_v1 = vld [vmem:[#allocation5 + $0xe8] sm:$0xff]  ;;  %v143_v2 = vld [vmem:[#allocation5 + $0xf8] sm:$0xff]  ;;  %vm166_vm0 = vcmask 523264  }
  0x4c   :  { %234 = vmatprep.mubr.f32.mxu0 %v1923_v0  ;;  %305 = vmatprep.mubr.f32.mxu1 %v1923_v0  ;;  %v140_v3 = vld [vmem:[#allocation5 + $0xe0] sm:$0xff]  ;;  %v142_v4 = vld [vmem:[#allocation5 + $0xf0] sm:$0xff]  ;;  %v137_v5 = vld [vmem:[#allocation5 + $0xc8] sm:$0xff]  ;;  %s1924_s20 = smov [#allocation13]  }
  0x4d   :  { %186 = vmatprep.subr.mxu0 %v141_v1  ;;  %257 = vmatprep.subr.mxu1 %v143_v2  ;;  %v139_v6 = vld [vmem:[#allocation5 + $0xd8] sm:$0xff]  ;;  %v136_v7 = vld [vmem:[#allocation5 + $0xc0] sm:$0xff]  ;;  %v138_v8 = vld [vmem:[#allocation5 + $0xd0] sm:$0xff]  ;;  %s1666_s21 = sshll.u32 %s1924_s20, 4  ;;  %s1667_s21 = int_to_ptr.vmem [resolvable:$true] %s1666_s21 }
  0x4e   :  { %187 = vmatpush1.msra.mxu0 %v140_v3  ;;  %258 = vmatpush1.msra.mxu1 %v142_v4  ;;  %v133_v9 = vld [vmem:[#allocation5 + $0xa8] sm:$0xff]  ;;  %v135_v10 = vld [vmem:[#allocation5 + $0xb8] sm:$0xff]  ;;  %v132_v11 = vld [vmem:[#allocation5 + $0xa0] sm:$0xff]  ;;  %s1883_s22 = scalar_lea.vmem %s1667_s21, 128  ;;  %p1888_p3 = scmp.lt.s32.totalorder %s1667_s21, %s1667_s21 }
  0x4f   :  { %188 = vmatprep.subr.mxu0 %v137_v5  ;;  %259 = vmatprep.subr.mxu1 %v139_v6  ;;  %v134_v12 = vld [vmem:[#allocation5 + $0xb0] sm:$0xff]  ;;  %v129_v13 = vld [vmem:[#allocation5 + $0x88] sm:$0xff]  ;;  %v131_v14 = vld [vmem:[#allocation5 + $0x98] sm:$0xff]  ;;  %p1884_p2 = scmp.ne.s32.totalorder %s1667_s21, %s1883_s22  ;;  %p1889_p4 = scmp.lt.s32.totalorder %s1883_s22, %s1883_s22 }
  0x50   :  { %189 = vmatpush1.msra.mxu0 %v136_v7  ;;  %260 = vmatpush1.msra.mxu1 %v138_v8  ;;  %v128_v15 = vld [vmem:[#allocation5 + $0x80] sm:$0xff]  ;;  %v130_v16 = vld [vmem:[#allocation5 + $0x90] sm:$0xff]  ;;  %v125_v17 = vld [vmem:[#allocation5 + $0x68] sm:$0xff] }
  0x51   :  { %190 = vmatprep.subr.mxu0 %v133_v9  ;;  %261 = vmatprep.subr.mxu1 %v135_v10  ;;  %v127_v18 = vld [vmem:[#allocation5 + $0x78] sm:$0xff]  ;;  %v124_v19 = vld [vmem:[#allocation5 + $0x60] sm:$0xff]  ;;  %v126_v20 = vld [vmem:[#allocation5 + $0x70] sm:$0xff]  ;;  %p1890_p5 = por %p1889_p4, %p1888_p3 }
  0x52   :  { %191 = vmatpush1.msra.mxu0 %v132_v11  ;;  %262 = vmatpush1.msra.mxu1 %v134_v12  ;;  %v121_v21 = vld [vmem:[#allocation5 + $0x48] sm:$0xff]  ;;  %v123_v22 = vld [vmem:[#allocation5 + $0x58] sm:$0xff]  ;;  %v120_v23 = vld [vmem:[#allocation5 + $0x40] sm:$0xff] }
  0x53   :  { %192 = vmatprep.subr.mxu0 %v129_v13  ;;  %263 = vmatprep.subr.mxu1 %v131_v14  ;;  %v122_v24 = vld [vmem:[#allocation5 + $0x50] sm:$0xff]  ;;  %v117_v25 = vld [vmem:[#allocation5 + $0x28] sm:$0xff]  ;;  %v119_v26 = vld [vmem:[#allocation5 + $0x38] sm:$0xff]  ;;  %p1891_p6 = pnand %p1890_p5, %p1884_p2 }
  0x54   :  { %193 = vmatpush1.msra.mxu0 %v128_v15  ;;  %264 = vmatpush1.msra.mxu1 %v130_v16  ;;  %v116_v27 = vld [vmem:[#allocation5 + $0x20] sm:$0xff]  ;;  %v118_v28 = vld [vmem:[#allocation5 + $0x30] sm:$0xff]  ;;  %v113_v29 = vld [vmem:[#allocation5 + $0x8] sm:$0xff] }
  0x55   :  { %194 = vmatprep.subr.mxu0 %v125_v17  ;;  %265 = vmatprep.subr.mxu1 %v127_v18  ;;  %v115_v30 = vld [vmem:[#allocation5 + $0x18] sm:$0xff]  ;;  %v112_v31 = vld [vmem:[#allocation5] sm:$0xff]  ;;  %v114_v32 = vld [vmem:[#allocation5 + $0x10] sm:$0xff] }
  0x56   :  { %195 = vmatpush1.msra.mxu0 %v124_v19  ;;  %266 = vmatpush1.msra.mxu1 %v126_v20  ;;  %v111_v33 = vld [vmem:[#allocation2] sm:$0xff]  ;;  %v377_v34 = vld [vmem:[#allocation8 + $0x1e8] sm:$0xff]  ;;  %v376_v36 = vld [vmem:[#allocation8 + $0x1e0] sm:$0xff] }
  0x57   :  { %196 = vmatprep.subr.mxu0 %v121_v21  ;;  %267 = vmatprep.subr.mxu1 %v123_v22  ;;  %v505_v35 = vld [vmem:[#allocation8 + $0x5e8] sm:$0xff]  ;;  %v504_v37 = vld [vmem:[#allocation8 + $0x5e0] sm:$0xff] }
  0x58   :  { %197 = vmatpush1.msra.mxu0 %v120_v23  ;;  %268 = vmatpush1.msra.mxu1 %v122_v24  ;;  %v373_v38 = vld [vmem:[#allocation8 + $0x1c8] sm:$0xff]  ;;  %v372_v40 = vld [vmem:[#allocation8 + $0x1c0] sm:$0xff] }
  0x59   :  { %198 = vmatprep.subr.mxu0 %v117_v25  ;;  %269 = vmatprep.subr.mxu1 %v119_v26  ;;  %v501_v39 = vld [vmem:[#allocation8 + $0x5c8] sm:$0xff]  ;;  %v500_v41 = vld [vmem:[#allocation8 + $0x5c0] sm:$0xff] }
  0x5a   :  { %199 = vmatpush1.msra.mxu0 %v116_v27  ;;  %270 = vmatpush1.msra.mxu1 %v118_v28  ;;  %v369_v42 = vld [vmem:[#allocation8 + $0x1a8] sm:$0xff]  ;;  %v368_v44 = vld [vmem:[#allocation8 + $0x1a0] sm:$0xff] }
  0x5b   :  { %200 = vmatprep.subr.mxu0 %v113_v29  ;;  %271 = vmatprep.subr.mxu1 %v115_v30  ;;  %v497_v43 = vld [vmem:[#allocation8 + $0x5a8] sm:$0xff]  ;;  %v496_v45 = vld [vmem:[#allocation8 + $0x5a0] sm:$0xff] }
  0x5c   :  { %201 = vmatpush1.msra.mxu0 %v112_v31  ;;  %272 = vmatpush1.msra.mxu1 %v114_v32  ;;  %v365_v46 = vld [vmem:[#allocation8 + $0x188] sm:$0xff]  ;;  %v364_v48 = vld [vmem:[#allocation8 + $0x180] sm:$0xff] }
  0x5d   :  { %1678 = vmatmul.mubr.msk.f32.vlgmr.msra.gmra.mxu0 %vm166_vm0, %v111_v33  ;;  %1679 = vmatmul.mubr.msk.f32.vlgmr.msra.gmra.mxu1 %vm166_vm0, %v111_v33  ;;  %v493_v47 = vld [vmem:[#allocation8 + $0x588] sm:$0xff]  ;;  %v492_v49 = vld [vmem:[#allocation8 + $0x580] sm:$0xff] }
  0x5e   :  { %594 = vmatprep.subr.mxu0 %v377_v34  ;;  %665 = vmatprep.subr.mxu1 %v505_v35  ;;  %v361_v50 = vld [vmem:[#allocation8 + $0x168] sm:$0xff]  ;;  %v360_v52 = vld [vmem:[#allocation8 + $0x160] sm:$0xff] }
  0x5f   :  { %595 = vmatpush1.msra.mxu0 %v376_v36  ;;  %666 = vmatpush1.msra.mxu1 %v504_v37  ;;  %v489_v51 = vld [vmem:[#allocation8 + $0x568] sm:$0xff]  ;;  %v488_v53 = vld [vmem:[#allocation8 + $0x560] sm:$0xff] }
  0x60   :  { %596 = vmatprep.subr.mxu0 %v373_v38  ;;  %667 = vmatprep.subr.mxu1 %v501_v39  ;;  %v357_v54 = vld [vmem:[#allocation8 + $0x148] sm:$0xff]  ;;  %v356_v56 = vld [vmem:[#allocation8 + $0x140] sm:$0xff] }
  0x61   :  { %597 = vmatpush1.msra.mxu0 %v372_v40  ;;  %668 = vmatpush1.msra.mxu1 %v500_v41  ;;  %v485_v55 = vld [vmem:[#allocation8 + $0x548] sm:$0xff]  ;;  %v484_v57 = vld [vmem:[#allocation8 + $0x540] sm:$0xff] }
  0x62   :  { %598 = vmatprep.subr.mxu0 %v369_v42  ;;  %669 = vmatprep.subr.mxu1 %v497_v43  ;;  %v353_v58 = vld [vmem:[#allocation8 + $0x128] sm:$0xff]  ;;  %v352_v60 = vld [vmem:[#allocation8 + $0x120] sm:$0xff] }
  0x63   :  { %599 = vmatpush1.msra.mxu0 %v368_v44  ;;  %670 = vmatpush1.msra.mxu1 %v496_v45  ;;  %v481_v59 = vld [vmem:[#allocation8 + $0x528] sm:$0xff]  ;;  %v480_v61 = vld [vmem:[#allocation8 + $0x520] sm:$0xff] }
  0x64   :  { %600 = vmatprep.subr.mxu0 %v365_v46  ;;  %671 = vmatprep.subr.mxu1 %v493_v47  ;;  %v349_v62 = vld [vmem:[#allocation8 + $0x108] sm:$0xff]  ;;  %v348_v0 = vld [vmem:[#allocation8 + $0x100] sm:$0xff] }
  0x65   :  { %601 = vmatpush1.msra.mxu0 %v364_v48  ;;  %672 = vmatpush1.msra.mxu1 %v492_v49  ;;  %v477_v63 = vld [vmem:[#allocation8 + $0x508] sm:$0xff]  ;;  %v476_v1 = vld [vmem:[#allocation8 + $0x500] sm:$0xff] }
  0x66   :  { %602 = vmatprep.subr.mxu0 %v361_v50  ;;  %673 = vmatprep.subr.mxu1 %v489_v51  ;;  %v345_v2 = vld [vmem:[#allocation8 + $0xe8] sm:$0xff]  ;;  %v344_v4 = vld [vmem:[#allocation8 + $0xe0] sm:$0xff] }
  0x67   :  { %603 = vmatpush1.msra.mxu0 %v360_v52  ;;  %674 = vmatpush1.msra.mxu1 %v488_v53  ;;  %v473_v3 = vld [vmem:[#allocation8 + $0x4e8] sm:$0xff]  ;;  %v472_v5 = vld [vmem:[#allocation8 + $0x4e0] sm:$0xff] }
  0x68   :  { %604 = vmatprep.subr.mxu0 %v357_v54  ;;  %675 = vmatprep.subr.mxu1 %v485_v55  ;;  %v341_v6 = vld [vmem:[#allocation8 + $0xc8] sm:$0xff]  ;;  %v340_v8 = vld [vmem:[#allocation8 + $0xc0] sm:$0xff] }
  0x69   :  { %605 = vmatpush1.msra.mxu0 %v356_v56  ;;  %676 = vmatpush1.msra.mxu1 %v484_v57  ;;  %v469_v7 = vld [vmem:[#allocation8 + $0x4c8] sm:$0xff]  ;;  %v468_v9 = vld [vmem:[#allocation8 + $0x4c0] sm:$0xff] }
  0x6a   :  { %606 = vmatprep.subr.mxu0 %v353_v58  ;;  %677 = vmatprep.subr.mxu1 %v481_v59  ;;  %v337_v10 = vld [vmem:[#allocation8 + $0xa8] sm:$0xff]  ;;  %v336_v12 = vld [vmem:[#allocation8 + $0xa0] sm:$0xff] }
  0x6b   :  { %607 = vmatpush1.msra.mxu0 %v352_v60  ;;  %678 = vmatpush1.msra.mxu1 %v480_v61  ;;  %v465_v11 = vld [vmem:[#allocation8 + $0x4a8] sm:$0xff]  ;;  %v464_v13 = vld [vmem:[#allocation8 + $0x4a0] sm:$0xff] }
  0x6c   :  { %608 = vmatprep.subr.mxu0 %v349_v62  ;;  %679 = vmatprep.subr.mxu1 %v477_v63  ;;  %v333_v14 = vld [vmem:[#allocation8 + $0x88] sm:$0xff]  ;;  %v332_v16 = vld [vmem:[#allocation8 + $0x80] sm:$0xff] }
  0x6d   :  { %609 = vmatpush1.msra.mxu0 %v348_v0  ;;  %680 = vmatpush1.msra.mxu1 %v476_v1  ;;  %v461_v15 = vld [vmem:[#allocation8 + $0x488] sm:$0xff]  ;;  %v460_v17 = vld [vmem:[#allocation8 + $0x480] sm:$0xff] }
  0x6e   :  { %610 = vmatprep.subr.mxu0 %v345_v2  ;;  %681 = vmatprep.subr.mxu1 %v473_v3  ;;  %v329_v18 = vld [vmem:[#allocation8 + $0x68] sm:$0xff]  ;;  %v328_v20 = vld [vmem:[#allocation8 + $0x60] sm:$0xff] }
  0x6f   :  { %611 = vmatpush1.msra.mxu0 %v344_v4  ;;  %682 = vmatpush1.msra.mxu1 %v472_v5  ;;  %v457_v19 = vld [vmem:[#allocation8 + $0x468] sm:$0xff]  ;;  %v456_v21 = vld [vmem:[#allocation8 + $0x460] sm:$0xff] }
  0x70   :  { %612 = vmatprep.subr.mxu0 %v341_v6  ;;  %683 = vmatprep.subr.mxu1 %v469_v7  ;;  %v325_v22 = vld [vmem:[#allocation8 + $0x48] sm:$0xff]  ;;  %v324_v24 = vld [vmem:[#allocation8 + $0x40] sm:$0xff] }
  0x71   :  { %613 = vmatpush1.msra.mxu0 %v340_v8  ;;  %684 = vmatpush1.msra.mxu1 %v468_v9  ;;  %v453_v23 = vld [vmem:[#allocation8 + $0x448] sm:$0xff]  ;;  %v452_v25 = vld [vmem:[#allocation8 + $0x440] sm:$0xff] }
  0x72   :  { %614 = vmatprep.subr.mxu0 %v337_v10  ;;  %685 = vmatprep.subr.mxu1 %v465_v11  ;;  %v321_v26 = vld [vmem:[#allocation8 + $0x28] sm:$0xff]  ;;  %v320_v28 = vld [vmem:[#allocation8 + $0x20] sm:$0xff] }
  0x73   :  { %615 = vmatpush1.msra.mxu0 %v336_v12  ;;  %686 = vmatpush1.msra.mxu1 %v464_v13  ;;  %v449_v27 = vld [vmem:[#allocation8 + $0x428] sm:$0xff]  ;;  %v448_v29 = vld [vmem:[#allocation8 + $0x420] sm:$0xff] }
  0x74   :  { %616 = vmatprep.subr.mxu0 %v333_v14  ;;  %687 = vmatprep.subr.mxu1 %v461_v15  ;;  %v317_v30 = vld [vmem:[#allocation8 + $0x8] sm:$0xff]  ;;  %v316_v32 = vld [vmem:[#allocation8] sm:$0xff] }
  0x75   :  { %617 = vmatpush1.msra.mxu0 %v332_v16  ;;  %688 = vmatpush1.msra.mxu1 %v460_v17  ;;  %v445_v31 = vld [vmem:[#allocation8 + $0x408] sm:$0xff]  ;;  %v444_v33 = vld [vmem:[#allocation8 + $0x400] sm:$0xff] }
  0x76   :  { %618 = vmatprep.subr.mxu0 %v329_v18  ;;  %689 = vmatprep.subr.mxu1 %v457_v19  ;;  %v441_v34 = vld [vmem:[#allocation8 + $0x3e8] sm:$0xff]  ;;  %v440_v36 = vld [vmem:[#allocation8 + $0x3e0] sm:$0xff] }
  0x77   :  { %619 = vmatpush1.msra.mxu0 %v328_v20  ;;  %690 = vmatpush1.msra.mxu1 %v456_v21  ;;  %v569_v35 = vld [vmem:[#allocation8 + $0x7e8] sm:$0xff]  ;;  %v568_v37 = vld [vmem:[#allocation8 + $0x7e0] sm:$0xff] }
  0x78   :  { %620 = vmatprep.subr.mxu0 %v325_v22  ;;  %691 = vmatprep.subr.mxu1 %v453_v23  ;;  %v437_v38 = vld [vmem:[#allocation8 + $0x3c8] sm:$0xff]  ;;  %v436_v40 = vld [vmem:[#allocation8 + $0x3c0] sm:$0xff] }
  0x79   :  { %621 = vmatpush1.msra.mxu0 %v324_v24  ;;  %692 = vmatpush1.msra.mxu1 %v452_v25  ;;  %v565_v39 = vld [vmem:[#allocation8 + $0x7c8] sm:$0xff]  ;;  %v564_v41 = vld [vmem:[#allocation8 + $0x7c0] sm:$0xff] }
  0x7a   :  { %622 = vmatprep.subr.mxu0 %v321_v26  ;;  %693 = vmatprep.subr.mxu1 %v449_v27  ;;  %v433_v42 = vld [vmem:[#allocation8 + $0x3a8] sm:$0xff]  ;;  %v432_v44 = vld [vmem:[#allocation8 + $0x3a0] sm:$0xff] }
  0x7b   :  { %623 = vmatpush1.msra.mxu0 %v320_v28  ;;  %694 = vmatpush1.msra.mxu1 %v448_v29  ;;  %v561_v43 = vld [vmem:[#allocation8 + $0x7a8] sm:$0xff]  ;;  %v560_v45 = vld [vmem:[#allocation8 + $0x7a0] sm:$0xff] }
  0x7c   :  { %624 = vmatprep.subr.mxu0 %v317_v30  ;;  %695 = vmatprep.subr.mxu1 %v445_v31  ;;  %v429_v46 = vld [vmem:[#allocation8 + $0x388] sm:$0xff]  ;;  %v428_v48 = vld [vmem:[#allocation8 + $0x380] sm:$0xff] }
  0x7d   :  { %625 = vmatpush1.msra.mxu0 %v316_v32  ;;  %696 = vmatpush1.msra.mxu1 %v444_v33  ;;  %v557_v47 = vld [vmem:[#allocation8 + $0x788] sm:$0xff]  ;;  %v556_v49 = vld [vmem:[#allocation8 + $0x780] sm:$0xff] }
  0x7e   :  { %626 = vmatprep.subr.mxu0 %v441_v34  ;;  %697 = vmatprep.subr.mxu1 %v569_v35  ;;  %v425_v50 = vld [vmem:[#allocation8 + $0x368] sm:$0xff]  ;;  %v424_v52 = vld [vmem:[#allocation8 + $0x360] sm:$0xff]  ;;  %v379_v34 = vld [vmem:[#allocation8 + $0x1f8] sm:$0xff] }
  0x7f   :  { %627 = vmatpush2.msra.mxu0 %v440_v36  ;;  %698 = vmatpush2.msra.mxu1 %v568_v37  ;;  %v553_v51 = vld [vmem:[#allocation8 + $0x768] sm:$0xff]  ;;  %v552_v53 = vld [vmem:[#allocation8 + $0x760] sm:$0xff]  ;;  %v507_v35 = vld [vmem:[#allocation8 + $0x5f8] sm:$0xff]  ;;  %v146_v36 = vlaneseq }
  0x80   :  { %628 = vmatprep.subr.mxu0 %v437_v38  ;;  %699 = vmatprep.subr.mxu1 %v565_v39  ;;  %v421_v54 = vld [vmem:[#allocation8 + $0x348] sm:$0xff]  ;;  %v420_v56 = vld [vmem:[#allocation8 + $0x340] sm:$0xff] }
  0x81   :  { %629 = vmatpush2.msra.mxu0 %v436_v40  ;;  %700 = vmatpush2.msra.mxu1 %v564_v41  ;;  %v549_v55 = vld [vmem:[#allocation8 + $0x748] sm:$0xff]  ;;  %v548_v57 = vld [vmem:[#allocation8 + $0x740] sm:$0xff]  ;;  %v147_v37 = vshrl.u32 %v146_v36, 7  ;;  %v144_v40 = vld [vmem:[#allocation7] sm:$0xf] }
  0x82   :  { %630 = vmatprep.subr.mxu0 %v433_v42  ;;  %701 = vmatprep.subr.mxu1 %v561_v43  ;;  %v417_v58 = vld [vmem:[#allocation8 + $0x328] sm:$0xff]  ;;  %v416_v60 = vld [vmem:[#allocation8 + $0x320] sm:$0xff]  ;;  %v466_v36 = vld [vmem:[#allocation8 + $0x4b0] sm:$0xff] }
  0x83   :  { %631 = vmatpush2.msra.mxu0 %v432_v44  ;;  %702 = vmatpush2.msra.mxu1 %v560_v45  ;;  %v545_v59 = vld [vmem:[#allocation8 + $0x728] sm:$0xff]  ;;  %v544_v61 = vld [vmem:[#allocation8 + $0x720] sm:$0xff]  ;;  %v2002_v38 = vsub.s32 2, %v147_v37  ;;  %v2004_v39 = vsub.s32 0, %v147_v37  ;;  %v2006_v41 = vsub.s32 1, %v147_v37  ;;  %v2008_v42 = vsub.s32 3, %v147_v37 }
  0x84   :  { %632 = vmatprep.subr.mxu0 %v429_v46  ;;  %703 = vmatprep.subr.mxu1 %v557_v47  ;;  %v413_v62 = vld [vmem:[#allocation8 + $0x308] sm:$0xff]  ;;  %v412_v0 = vld [vmem:[#allocation8 + $0x300] sm:$0xff]  ;;  %v335_v37 = vld [vmem:[#allocation8 + $0x98] sm:$0xff] }
  0x85   :  { %633 = vmatpush2.msra.mxu0 %v428_v48  ;;  %704 = vmatpush2.msra.mxu1 %v556_v49  ;;  %v541_v63 = vld [vmem:[#allocation8 + $0x708] sm:$0xff]  ;;  %v540_v1 = vld [vmem:[#allocation8 + $0x700] sm:$0xff]  ;;  %v157_v43 = vrot.slane %v144_v40, %v2002_v38  ;;  %v149_v44 = vrot.slane %v144_v40, %v2004_v39  ;;  %v153_v45 = vrot.slane %v144_v40, %v2006_v41 }
  0x86   :  { %634 = vmatprep.subr.mxu0 %v425_v50  ;;  %705 = vmatprep.subr.mxu1 %v553_v51  ;;  %v409_v2 = vld [vmem:[#allocation8 + $0x2e8] sm:$0xff]  ;;  %v408_v4 = vld [vmem:[#allocation8 + $0x2e0] sm:$0xff]  ;;  %v161_v46 = vrot.slane %v144_v40, %v2008_v42  ;;  %v463_v40 = vld [vmem:[#allocation8 + $0x498] sm:$0xff] }
  0x87   :  { %635 = vmatpush2.msra.mxu0 %v424_v52  ;;  %706 = vmatpush2.msra.mxu1 %v552_v53  ;;  %v537_v3 = vld [vmem:[#allocation8 + $0x6e8] sm:$0xff]  ;;  %v536_v5 = vld [vmem:[#allocation8 + $0x6e0] sm:$0xff] }
  0x88   :  { %636 = vmatprep.subr.mxu0 %v421_v54  ;;  %707 = vmatprep.subr.mxu1 %v549_v55  ;;  %v405_v6 = vld [vmem:[#allocation8 + $0x2c8] sm:$0xff]  ;;  %v404_v8 = vld [vmem:[#allocation8 + $0x2c0] sm:$0xff] }
  0x89   :  { %637 = vmatpush2.msra.mxu0 %v420_v56  ;;  %708 = vmatpush2.msra.mxu1 %v548_v57  ;;  %v533_v7 = vld [vmem:[#allocation8 + $0x6c8] sm:$0xff]  ;;  %v532_v9 = vld [vmem:[#allocation8 + $0x6c0] sm:$0xff] }
  0x8a   :  { %638 = vmatprep.subr.mxu0 %v417_v58  ;;  %709 = vmatprep.subr.mxu1 %v545_v59  ;;  %v401_v10 = vld [vmem:[#allocation8 + $0x2a8] sm:$0xff]  ;;  %v400_v12 = vld [vmem:[#allocation8 + $0x2a0] sm:$0xff]  ;;  %v378_v59 = vld [vmem:[#allocation8 + $0x1f0] sm:$0xff] }
  0x8b   :  { %639 = vmatpush2.msra.mxu0 %v416_v60  ;;  %710 = vmatpush2.msra.mxu1 %v544_v61  ;;  %v529_v11 = vld [vmem:[#allocation8 + $0x6a8] sm:$0xff]  ;;  %v528_v13 = vld [vmem:[#allocation8 + $0x6a0] sm:$0xff]  ;;  %v506_v60 = vld [vmem:[#allocation8 + $0x5f0] sm:$0xff] }
  0x8c   :  { %640 = vmatprep.subr.mxu0 %v413_v62  ;;  %711 = vmatprep.subr.mxu1 %v541_v63  ;;  %v397_v14 = vld [vmem:[#allocation8 + $0x288] sm:$0xff]  ;;  %v396_v16 = vld [vmem:[#allocation8 + $0x280] sm:$0xff]  ;;  %v375_v61 = vld [vmem:[#allocation8 + $0x1d8] sm:$0xff] }
  0x8d   :  { %641 = vmatpush2.msra.mxu0 %v412_v0  ;;  %712 = vmatpush2.msra.mxu1 %v540_v1  ;;  %v525_v15 = vld [vmem:[#allocation8 + $0x688] sm:$0xff]  ;;  %v524_v17 = vld [vmem:[#allocation8 + $0x680] sm:$0xff]  ;;  %v503_v62 = vld [vmem:[#allocation8 + $0x5d8] sm:$0xff] }
  0x8e   :  { %642 = vmatprep.subr.mxu0 %v409_v2  ;;  %713 = vmatprep.subr.mxu1 %v537_v3  ;;  %v393_v18 = vld [vmem:[#allocation8 + $0x268] sm:$0xff]  ;;  %v392_v20 = vld [vmem:[#allocation8 + $0x260] sm:$0xff]  ;;  %v374_v63 = vld [vmem:[#allocation8 + $0x1d0] sm:$0xff] }
  0x8f   :  { %643 = vmatpush2.msra.mxu0 %v408_v4  ;;  %714 = vmatpush2.msra.mxu1 %v536_v5  ;;  %v521_v19 = vld [vmem:[#allocation8 + $0x668] sm:$0xff]  ;;  %v520_v21 = vld [vmem:[#allocation8 + $0x660] sm:$0xff]  ;;  %v502_v0 = vld [vmem:[#allocation8 + $0x5d0] sm:$0xff] }
  0x90   :  { %644 = vmatprep.subr.mxu0 %v405_v6  ;;  %715 = vmatprep.subr.mxu1 %v533_v7  ;;  %v389_v22 = vld [vmem:[#allocation8 + $0x248] sm:$0xff]  ;;  %v388_v24 = vld [vmem:[#allocation8 + $0x240] sm:$0xff]  ;;  %v371_v1 = vld [vmem:[#allocation8 + $0x1b8] sm:$0xff] }
  0x91   :  { %645 = vmatpush2.msra.mxu0 %v404_v8  ;;  %716 = vmatpush2.msra.mxu1 %v532_v9  ;;  %v517_v23 = vld [vmem:[#allocation8 + $0x648] sm:$0xff]  ;;  %v516_v25 = vld [vmem:[#allocation8 + $0x640] sm:$0xff]  ;;  %v499_v2 = vld [vmem:[#allocation8 + $0x5b8] sm:$0xff] }
  0x92   :  { %646 = vmatprep.subr.mxu0 %v401_v10  ;;  %717 = vmatprep.subr.mxu1 %v529_v11  ;;  %v385_v26 = vld [vmem:[#allocation8 + $0x228] sm:$0xff]  ;;  %v384_v28 = vld [vmem:[#allocation8 + $0x220] sm:$0xff]  ;;  %v370_v3 = vld [vmem:[#allocation8 + $0x1b0] sm:$0xff] }
  0x93   :  { %647 = vmatpush2.msra.mxu0 %v400_v12  ;;  %718 = vmatpush2.msra.mxu1 %v528_v13  ;;  %v513_v27 = vld [vmem:[#allocation8 + $0x628] sm:$0xff]  ;;  %v512_v29 = vld [vmem:[#allocation8 + $0x620] sm:$0xff]  ;;  %v498_v4 = vld [vmem:[#allocation8 + $0x5b0] sm:$0xff] }
  0x94   :  { %648 = vmatprep.subr.mxu0 %v397_v14  ;;  %719 = vmatprep.subr.mxu1 %v525_v15  ;;  %v381_v30 = vld [vmem:[#allocation8 + $0x208] sm:$0xff]  ;;  %v380_v32 = vld [vmem:[#allocation8 + $0x200] sm:$0xff]  ;;  %v367_v5 = vld [vmem:[#allocation8 + $0x198] sm:$0xff] }
  0x95   :  { %649 = vmatpush2.msra.mxu0 %v396_v16  ;;  %720 = vmatpush2.msra.mxu1 %v524_v17  ;;  %v509_v31 = vld [vmem:[#allocation8 + $0x608] sm:$0xff]  ;;  %v508_v33 = vld [vmem:[#allocation8 + $0x600] sm:$0xff]  ;;  %v495_v6 = vld [vmem:[#allocation8 + $0x598] sm:$0xff] }
  0x96   :  { %650 = vmatprep.subr.mxu0 %v393_v18  ;;  %721 = vmatprep.subr.mxu1 %v521_v19  ;;  %v366_v7 = vld [vmem:[#allocation8 + $0x190] sm:$0xff]  ;;  %v363_v9 = vld [vmem:[#allocation8 + $0x178] sm:$0xff] }
  0x97   :  { %651 = vmatpush2.msra.mxu0 %v392_v20  ;;  %722 = vmatpush2.msra.mxu1 %v520_v21  ;;  %v494_v8 = vld [vmem:[#allocation8 + $0x590] sm:$0xff]  ;;  %v491_v10 = vld [vmem:[#allocation8 + $0x578] sm:$0xff] }
  0x98   :  { %652 = vmatprep.subr.mxu0 %v389_v22  ;;  %723 = vmatprep.subr.mxu1 %v517_v23  ;;  %v362_v11 = vld [vmem:[#allocation8 + $0x170] sm:$0xff]  ;;  %v359_v13 = vld [vmem:[#allocation8 + $0x158] sm:$0xff] }
  0x99   :  { %653 = vmatpush2.msra.mxu0 %v388_v24  ;;  %724 = vmatpush2.msra.mxu1 %v516_v25  ;;  %v490_v12 = vld [vmem:[#allocation8 + $0x570] sm:$0xff]  ;;  %v487_v14 = vld [vmem:[#allocation8 + $0x558] sm:$0xff] }
  0x9a   :  { %654 = vmatprep.subr.mxu0 %v385_v26  ;;  %725 = vmatprep.subr.mxu1 %v513_v27  ;;  %v358_v15 = vld [vmem:[#allocation8 + $0x150] sm:$0xff]  ;;  %v355_v17 = vld [vmem:[#allocation8 + $0x138] sm:$0xff] }
  0x9b   :  { %655 = vmatpush2.msra.mxu0 %v384_v28  ;;  %726 = vmatpush2.msra.mxu1 %v512_v29  ;;  %v486_v16 = vld [vmem:[#allocation8 + $0x550] sm:$0xff]  ;;  %v483_v18 = vld [vmem:[#allocation8 + $0x538] sm:$0xff] }
  0x9c   :  { %656 = vmatprep.subr.mxu0 %v381_v30  ;;  %727 = vmatprep.subr.mxu1 %v509_v31  ;;  %v354_v19 = vld [vmem:[#allocation8 + $0x130] sm:$0xff]  ;;  %v351_v21 = vld [vmem:[#allocation8 + $0x118] sm:$0xff] }
  0x9d   :  { %657 = vmatpush2.msra.mxu0 %v380_v32  ;;  %728 = vmatpush2.msra.mxu1 %v508_v33  ;;  %v482_v20 = vld [vmem:[#allocation8 + $0x530] sm:$0xff]  ;;  %v479_v22 = vld [vmem:[#allocation8 + $0x518] sm:$0xff] }
  0x9e   :  { %736 = vmatprep.subr.mxu0 %v379_v34  ;;  %807 = vmatprep.subr.mxu1 %v507_v35  ;;  %v350_v23 = vld [vmem:[#allocation8 + $0x110] sm:$0xff]  ;;  %v347_v25 = vld [vmem:[#allocation8 + $0xf8] sm:$0xff] }
  0x9f   :  { %v478_v24 = vld [vmem:[#allocation8 + $0x510] sm:$0xff]  ;;  %v475_v26 = vld [vmem:[#allocation8 + $0x4f8] sm:$0xff] }
  0xa0   :  { %v346_v27 = vld [vmem:[#allocation8 + $0xf0] sm:$0xff]  ;;  %v343_v29 = vld [vmem:[#allocation8 + $0xd8] sm:$0xff] }
  0xa1   :  { %v474_v28 = vld [vmem:[#allocation8 + $0x4f0] sm:$0xff]  ;;  %v471_v30 = vld [vmem:[#allocation8 + $0x4d8] sm:$0xff] }
  0xa2   :  { %v342_v31 = vld [vmem:[#allocation8 + $0xd0] sm:$0xff]  ;;  %v339_v33 = vld [vmem:[#allocation8 + $0xb8] sm:$0xff] }
  0xa3   :  { %v470_v32 = vld [vmem:[#allocation8 + $0x4d0] sm:$0xff]  ;;  %v467_v34 = vld [vmem:[#allocation8 + $0x4b8] sm:$0xff] }
  0xa4   :  { %v338_v35 = vld [vmem:[#allocation8 + $0xb0] sm:$0xff] }
 0x11d   :  { %v236_v47 = vpop.f32.mrf.mxu0  ;;  %v307_v48 = vpop.f32.mrf.mxu1 }
 0x11e   :  { %v2014_v49 = vadd.f32 %v307_v48, %v157_v43  ;;  %v2016_v50 = vadd.f32 %v236_v47, %v149_v44  ;;  %v334_v43 = vld [vmem:[#allocation8 + $0x90] sm:$0xff] }
 0x11f   :  { %v238_v51 = vpop.f32.mrf.mxu0  ;;  %v309_v52 = vpop.f32.mrf.mxu1  ;;  %v462_v44 = vld [vmem:[#allocation8 + $0x490] sm:$0xff] }
 0x120   :  { %v239_v53 = vadd.f32 %v238_v51, %v153_v45  ;;  %v310_v54 = vadd.f32 %v309_v52, %v161_v46  ;;  %v314_v55 = vmax.f32 %v2014_v49, 0.0  ;;  %v312_v58 = vmax.f32 %v2016_v50, 0.0  ;;  %v331_v45 = vld [vmem:[#allocation8 + $0x78] sm:$0xff]  ;;  %v330_v47 = vld [vmem:[#allocation8 + $0x70] sm:$0xff]  ;;  %v1071_v50 = vld [vmem:[#allocation10 + $0x5e8] sm:$0xff] }
 0x121   :  { %v459_v46 = vld [vmem:[#allocation8 + $0x478] sm:$0xff]  ;;  %v458_v48 = vld [vmem:[#allocation8 + $0x470] sm:$0xff]  ;;  %v1070_v49 = vld [vmem:[#allocation10 + $0x5e0] sm:$0xff] }
 0x122   :  { %v313_v56 = vmax.f32 %v239_v53, 0.0  ;;  %v315_v57 = vmax.f32 %v310_v54, 0.0  ;;  %v327_v51 = vld [vmem:[#allocation8 + $0x58] sm:$0xff]  ;;  %v326_v53 = vld [vmem:[#allocation8 + $0x50] sm:$0xff] }
 0x123   :  { %v455_v52 = vld [vmem:[#allocation8 + $0x458] sm:$0xff]  ;;  %v454_v54 = vld [vmem:[#allocation8 + $0x450] sm:$0xff] }
 0x124   :  { %658 = vmatprep.mubr.f32.mxu0 %v313_v56  ;;  %729 = vmatprep.mubr.f32.mxu1 %v315_v57 }
 0x125   :  { %659 = vmatmul.mubr.f32.vlgmr.msra.gmra.mxu0 %v312_v58  ;;  %730 = vmatmul.mubr.f32.vlgmr.msra.gmra.mxu1 %v314_v55 }
 0x126   :  { %737 = vmatpush1.msra.mxu0 %v378_v59  ;;  %808 = vmatpush1.msra.mxu1 %v506_v60  ;;  %v322_v59 = vld [vmem:[#allocation8 + $0x30] sm:$0xff] }
 0x127   :  { %738 = vmatprep.subr.mxu0 %v375_v61  ;;  %800 = vmatprep.mubr.f32.mxu0 %v313_v56  ;;  %v323_v56 = vld [vmem:[#allocation8 + $0x38] sm:$0xff]  ;;  %v450_v60 = vld [vmem:[#allocation8 + $0x430] sm:$0xff] }
 0x128   :  { %809 = vmatprep.subr.mxu1 %v503_v62  ;;  %871 = vmatprep.mubr.f32.mxu1 %v315_v57  ;;  %v451_v57 = vld [vmem:[#allocation8 + $0x438] sm:$0xff] }
 0x129   :  { %739 = vmatpush1.msra.mxu0 %v374_v63  ;;  %810 = vmatpush1.msra.mxu1 %v502_v0  ;;  %v319_v61 = vld [vmem:[#allocation8 + $0x18] sm:$0xff]  ;;  %v318_v63 = vld [vmem:[#allocation8 + $0x10] sm:$0xff] }
 0x12a   :  { %740 = vmatprep.subr.mxu0 %v371_v1  ;;  %811 = vmatprep.subr.mxu1 %v499_v2  ;;  %v447_v62 = vld [vmem:[#allocation8 + $0x418] sm:$0xff]  ;;  %v446_v0 = vld [vmem:[#allocation8 + $0x410] sm:$0xff] }
 0x12b   :  { %741 = vmatpush1.msra.mxu0 %v370_v3  ;;  %812 = vmatpush1.msra.mxu1 %v498_v4  ;;  %v443_v1 = vld [vmem:[#allocation8 + $0x3f8] sm:$0xff]  ;;  %v442_v3 = vld [vmem:[#allocation8 + $0x3f0] sm:$0xff] }
 0x12c   :  { %742 = vmatprep.subr.mxu0 %v367_v5  ;;  %813 = vmatprep.subr.mxu1 %v495_v6  ;;  %v571_v2 = vld [vmem:[#allocation8 + $0x7f8] sm:$0xff]  ;;  %v570_v4 = vld [vmem:[#allocation8 + $0x7f0] sm:$0xff] }
 0x12d   :  { %743 = vmatpush1.msra.mxu0 %v366_v7  ;;  %814 = vmatpush1.msra.mxu1 %v494_v8  ;;  %v439_v5 = vld [vmem:[#allocation8 + $0x3d8] sm:$0xff]  ;;  %v438_v7 = vld [vmem:[#allocation8 + $0x3d0] sm:$0xff] }
 0x12e   :  { %744 = vmatprep.subr.mxu0 %v363_v9  ;;  %815 = vmatprep.subr.mxu1 %v491_v10  ;;  %v567_v6 = vld [vmem:[#allocation8 + $0x7d8] sm:$0xff]  ;;  %v566_v8 = vld [vmem:[#allocation8 + $0x7d0] sm:$0xff] }
 0x12f   :  { %745 = vmatpush1.msra.mxu0 %v362_v11  ;;  %816 = vmatpush1.msra.mxu1 %v490_v12  ;;  %v435_v9 = vld [vmem:[#allocation8 + $0x3b8] sm:$0xff]  ;;  %v434_v11 = vld [vmem:[#allocation8 + $0x3b0] sm:$0xff] }
 0x130   :  { %746 = vmatprep.subr.mxu0 %v359_v13  ;;  %817 = vmatprep.subr.mxu1 %v487_v14  ;;  %v563_v10 = vld [vmem:[#allocation8 + $0x7b8] sm:$0xff]  ;;  %v562_v12 = vld [vmem:[#allocation8 + $0x7b0] sm:$0xff] }
 0x131   :  { %747 = vmatpush1.msra.mxu0 %v358_v15  ;;  %818 = vmatpush1.msra.mxu1 %v486_v16  ;;  %v431_v13 = vld [vmem:[#allocation8 + $0x398] sm:$0xff]  ;;  %v430_v15 = vld [vmem:[#allocation8 + $0x390] sm:$0xff] }
 0x132   :  { %748 = vmatprep.subr.mxu0 %v355_v17  ;;  %819 = vmatprep.subr.mxu1 %v483_v18  ;;  %v559_v14 = vld [vmem:[#allocation8 + $0x798] sm:$0xff]  ;;  %v558_v16 = vld [vmem:[#allocation8 + $0x790] sm:$0xff] }
 0x133   :  { %749 = vmatpush1.msra.mxu0 %v354_v19  ;;  %820 = vmatpush1.msra.mxu1 %v482_v20  ;;  %v427_v17 = vld [vmem:[#allocation8 + $0x378] sm:$0xff]  ;;  %v426_v19 = vld [vmem:[#allocation8 + $0x370] sm:$0xff] }
 0x134   :  { %750 = vmatprep.subr.mxu0 %v351_v21  ;;  %821 = vmatprep.subr.mxu1 %v479_v22  ;;  %v555_v18 = vld [vmem:[#allocation8 + $0x778] sm:$0xff]  ;;  %v554_v20 = vld [vmem:[#allocation8 + $0x770] sm:$0xff] }
 0x135   :  { %751 = vmatpush1.msra.mxu0 %v350_v23  ;;  %822 = vmatpush1.msra.mxu1 %v478_v24  ;;  %v423_v21 = vld [vmem:[#allocation8 + $0x358] sm:$0xff]  ;;  %v422_v23 = vld [vmem:[#allocation8 + $0x350] sm:$0xff] }
 0x136   :  { %752 = vmatprep.subr.mxu0 %v347_v25  ;;  %823 = vmatprep.subr.mxu1 %v475_v26  ;;  %v551_v22 = vld [vmem:[#allocation8 + $0x758] sm:$0xff]  ;;  %v550_v24 = vld [vmem:[#allocation8 + $0x750] sm:$0xff] }
 0x137   :  { %753 = vmatpush1.msra.mxu0 %v346_v27  ;;  %824 = vmatpush1.msra.mxu1 %v474_v28  ;;  %v419_v25 = vld [vmem:[#allocation8 + $0x338] sm:$0xff]  ;;  %v418_v27 = vld [vmem:[#allocation8 + $0x330] sm:$0xff] }
 0x138   :  { %754 = vmatprep.subr.mxu0 %v343_v29  ;;  %825 = vmatprep.subr.mxu1 %v471_v30  ;;  %v547_v26 = vld [vmem:[#allocation8 + $0x738] sm:$0xff]  ;;  %v546_v28 = vld [vmem:[#allocation8 + $0x730] sm:$0xff] }
 0x139   :  { %755 = vmatpush1.msra.mxu0 %v342_v31  ;;  %826 = vmatpush1.msra.mxu1 %v470_v32  ;;  %v415_v29 = vld [vmem:[#allocation8 + $0x318] sm:$0xff]  ;;  %v414_v31 = vld [vmem:[#allocation8 + $0x310] sm:$0xff] }
 0x13a   :  { %756 = vmatprep.subr.mxu0 %v339_v33  ;;  %827 = vmatprep.subr.mxu1 %v467_v34  ;;  %v543_v30 = vld [vmem:[#allocation8 + $0x718] sm:$0xff]  ;;  %v542_v32 = vld [vmem:[#allocation8 + $0x710] sm:$0xff] }
 0x13b   :  { %757 = vmatpush1.msra.mxu0 %v338_v35  ;;  %828 = vmatpush1.msra.mxu1 %v466_v36  ;;  %v411_v33 = vld [vmem:[#allocation8 + $0x2f8] sm:$0xff]  ;;  %v410_v35 = vld [vmem:[#allocation8 + $0x2f0] sm:$0xff] }
 0x13c   :  { %758 = vmatprep.subr.mxu0 %v335_v37  ;;  %829 = vmatprep.subr.mxu1 %v463_v40  ;;  %v539_v34 = vld [vmem:[#allocation8 + $0x6f8] sm:$0xff]  ;;  %v538_v36 = vld [vmem:[#allocation8 + $0x6f0] sm:$0xff] }
 0x13d   :  { %759 = vmatpush1.msra.mxu0 %v334_v43  ;;  %830 = vmatpush1.msra.mxu1 %v462_v44  ;;  %v407_v37 = vld [vmem:[#allocation8 + $0x2d8] sm:$0xff]  ;;  %v406_v43 = vld [vmem:[#allocation8 + $0x2d0] sm:$0xff] }
 0x13e   :  { %760 = vmatprep.subr.mxu0 %v331_v45  ;;  %831 = vmatprep.subr.mxu1 %v459_v46  ;;  %v535_v40 = vld [vmem:[#allocation8 + $0x6d8] sm:$0xff]  ;;  %v534_v44 = vld [vmem:[#allocation8 + $0x6d0] sm:$0xff] }
 0x13f   :  { %761 = vmatpush1.msra.mxu0 %v330_v47  ;;  %832 = vmatpush1.msra.mxu1 %v458_v48  ;;  %v403_v45 = vld [vmem:[#allocation8 + $0x2b8] sm:$0xff]  ;;  %v402_v47 = vld [vmem:[#allocation8 + $0x2b0] sm:$0xff] }
 0x140   :  { %762 = vmatprep.subr.mxu0 %v327_v51  ;;  %833 = vmatprep.subr.mxu1 %v455_v52  ;;  %v531_v46 = vld [vmem:[#allocation8 + $0x6b8] sm:$0xff]  ;;  %v530_v48 = vld [vmem:[#allocation8 + $0x6b0] sm:$0xff] }
 0x141   :  { %763 = vmatpush1.msra.mxu0 %v326_v53  ;;  %834 = vmatpush1.msra.mxu1 %v454_v54  ;;  %v399_v51 = vld [vmem:[#allocation8 + $0x298] sm:$0xff]  ;;  %v398_v53 = vld [vmem:[#allocation8 + $0x290] sm:$0xff] }
 0x142   :  { %764 = vmatprep.subr.mxu0 %v323_v56  ;;  %835 = vmatprep.subr.mxu1 %v451_v57  ;;  %v527_v52 = vld [vmem:[#allocation8 + $0x698] sm:$0xff]  ;;  %v526_v54 = vld [vmem:[#allocation8 + $0x690] sm:$0xff] }
 0x143   :  { %765 = vmatpush1.msra.mxu0 %v322_v59  ;;  %836 = vmatpush1.msra.mxu1 %v450_v60  ;;  %v395_v56 = vld [vmem:[#allocation8 + $0x278] sm:$0xff]  ;;  %v394_v59 = vld [vmem:[#allocation8 + $0x270] sm:$0xff] }
 0x144   :  { %766 = vmatprep.subr.mxu0 %v319_v61  ;;  %837 = vmatprep.subr.mxu1 %v447_v62  ;;  %v523_v57 = vld [vmem:[#allocation8 + $0x678] sm:$0xff]  ;;  %v522_v60 = vld [vmem:[#allocation8 + $0x670] sm:$0xff] }
 0x145   :  { %767 = vmatpush1.msra.mxu0 %v318_v63  ;;  %838 = vmatpush1.msra.mxu1 %v446_v0  ;;  %v391_v61 = vld [vmem:[#allocation8 + $0x258] sm:$0xff]  ;;  %v390_v63 = vld [vmem:[#allocation8 + $0x250] sm:$0xff] }
 0x146   :  { %768 = vmatprep.subr.mxu0 %v443_v1  ;;  %839 = vmatprep.subr.mxu1 %v571_v2  ;;  %v519_v62 = vld [vmem:[#allocation8 + $0x658] sm:$0xff]  ;;  %v518_v0 = vld [vmem:[#allocation8 + $0x650] sm:$0xff] }
 0x147   :  { %769 = vmatpush2.msra.mxu0 %v442_v3  ;;  %840 = vmatpush2.msra.mxu1 %v570_v4  ;;  %v387_v1 = vld [vmem:[#allocation8 + $0x238] sm:$0xff]  ;;  %v386_v3 = vld [vmem:[#allocation8 + $0x230] sm:$0xff] }
 0x148   :  { %770 = vmatprep.subr.mxu0 %v439_v5  ;;  %841 = vmatprep.subr.mxu1 %v567_v6  ;;  %v515_v2 = vld [vmem:[#allocation8 + $0x638] sm:$0xff]  ;;  %v514_v4 = vld [vmem:[#allocation8 + $0x630] sm:$0xff] }
 0x149   :  { %771 = vmatpush2.msra.mxu0 %v438_v7  ;;  %842 = vmatpush2.msra.mxu1 %v566_v8  ;;  %v383_v5 = vld [vmem:[#allocation8 + $0x218] sm:$0xff]  ;;  %v382_v7 = vld [vmem:[#allocation8 + $0x210] sm:$0xff] }
 0x14a   :  { %772 = vmatprep.subr.mxu0 %v435_v9  ;;  %843 = vmatprep.subr.mxu1 %v563_v10  ;;  %v511_v6 = vld [vmem:[#allocation8 + $0x618] sm:$0xff]  ;;  %v510_v8 = vld [vmem:[#allocation8 + $0x610] sm:$0xff]  ;;  %v943_v9 = vld [vmem:[#allocation10 + $0x1e8] sm:$0xff] }
 0x14b   :  { %773 = vmatpush2.msra.mxu0 %v434_v11  ;;  %844 = vmatpush2.msra.mxu1 %v562_v12  ;;  %v942_v10 = vld [vmem:[#allocation10 + $0x1e0] sm:$0xff]  ;;  %v939_v11 = vld [vmem:[#allocation10 + $0x1c8] sm:$0xff] }
 0x14c   :  { %774 = vmatprep.subr.mxu0 %v431_v13  ;;  %845 = vmatprep.subr.mxu1 %v559_v14  ;;  %v938_v12 = vld [vmem:[#allocation10 + $0x1c0] sm:$0xff]  ;;  %v935_v13 = vld [vmem:[#allocation10 + $0x1a8] sm:$0xff] }
 0x14d   :  { %775 = vmatpush2.msra.mxu0 %v430_v15  ;;  %846 = vmatpush2.msra.mxu1 %v558_v16  ;;  %v934_v14 = vld [vmem:[#allocation10 + $0x1a0] sm:$0xff]  ;;  %v931_v15 = vld [vmem:[#allocation10 + $0x188] sm:$0xff] }
 0x14e   :  { %776 = vmatprep.subr.mxu0 %v427_v17  ;;  %847 = vmatprep.subr.mxu1 %v555_v18  ;;  %v930_v16 = vld [vmem:[#allocation10 + $0x180] sm:$0xff]  ;;  %v927_v17 = vld [vmem:[#allocation10 + $0x168] sm:$0xff] }
 0x14f   :  { %777 = vmatpush2.msra.mxu0 %v426_v19  ;;  %848 = vmatpush2.msra.mxu1 %v554_v20  ;;  %v926_v18 = vld [vmem:[#allocation10 + $0x160] sm:$0xff]  ;;  %v1067_v19 = vld [vmem:[#allocation10 + $0x5c8] sm:$0xff] }
 0x150   :  { %778 = vmatprep.subr.mxu0 %v423_v21  ;;  %849 = vmatprep.subr.mxu1 %v551_v22  ;;  %v919_v20 = vld [vmem:[#allocation10 + $0x128] sm:$0xff]  ;;  %v1066_v21 = vld [vmem:[#allocation10 + $0x5c0] sm:$0xff] }
 0x151   :  { %779 = vmatpush2.msra.mxu0 %v422_v23  ;;  %850 = vmatpush2.msra.mxu1 %v550_v24  ;;  %v918_v22 = vld [vmem:[#allocation10 + $0x120] sm:$0xff]  ;;  %v1063_v23 = vld [vmem:[#allocation10 + $0x5a8] sm:$0xff] }
 0x152   :  { %780 = vmatprep.subr.mxu0 %v419_v25  ;;  %851 = vmatprep.subr.mxu1 %v547_v26  ;;  %v915_v24 = vld [vmem:[#allocation10 + $0x108] sm:$0xff]  ;;  %v1062_v25 = vld [vmem:[#allocation10 + $0x5a0] sm:$0xff] }
 0x153   :  { %781 = vmatpush2.msra.mxu0 %v418_v27  ;;  %852 = vmatpush2.msra.mxu1 %v546_v28  ;;  %v914_v26 = vld [vmem:[#allocation10 + $0x100] sm:$0xff]  ;;  %v1059_v27 = vld [vmem:[#allocation10 + $0x588] sm:$0xff] }
 0x154   :  { %782 = vmatprep.subr.mxu0 %v415_v29  ;;  %853 = vmatprep.subr.mxu1 %v543_v30  ;;  %v911_v28 = vld [vmem:[#allocation10 + $0xe8] sm:$0xff]  ;;  %v1058_v29 = vld [vmem:[#allocation10 + $0x580] sm:$0xff] }
 0x155   :  { %783 = vmatpush2.msra.mxu0 %v414_v31  ;;  %854 = vmatpush2.msra.mxu1 %v542_v32  ;;  %v910_v30 = vld [vmem:[#allocation10 + $0xe0] sm:$0xff]  ;;  %v1055_v31 = vld [vmem:[#allocation10 + $0x568] sm:$0xff] }
 0x156   :  { %784 = vmatprep.subr.mxu0 %v411_v33  ;;  %855 = vmatprep.subr.mxu1 %v539_v34  ;;  %v907_v32 = vld [vmem:[#allocation10 + $0xc8] sm:$0xff]  ;;  %v1054_v33 = vld [vmem:[#allocation10 + $0x560] sm:$0xff] }
 0x157   :  { %785 = vmatpush2.msra.mxu0 %v410_v35  ;;  %856 = vmatpush2.msra.mxu1 %v538_v36  ;;  %v906_v34 = vld [vmem:[#allocation10 + $0xc0] sm:$0xff]  ;;  %v1051_v35 = vld [vmem:[#allocation10 + $0x548] sm:$0xff] }
 0x158   :  { %786 = vmatprep.subr.mxu0 %v407_v37  ;;  %857 = vmatprep.subr.mxu1 %v535_v40  ;;  %v903_v36 = vld [vmem:[#allocation10 + $0xa8] sm:$0xff]  ;;  %v1050_v37 = vld [vmem:[#allocation10 + $0x540] sm:$0xff] }
 0x159   :  { %787 = vmatpush2.msra.mxu0 %v406_v43  ;;  %858 = vmatpush2.msra.mxu1 %v534_v44  ;;  %v902_v40 = vld [vmem:[#allocation10 + $0xa0] sm:$0xff]  ;;  %v1047_v43 = vld [vmem:[#allocation10 + $0x528] sm:$0xff] }
 0x15a   :  { %788 = vmatprep.subr.mxu0 %v403_v45  ;;  %859 = vmatprep.subr.mxu1 %v531_v46  ;;  %v899_v44 = vld [vmem:[#allocation10 + $0x88] sm:$0xff]  ;;  %v1046_v45 = vld [vmem:[#allocation10 + $0x520] sm:$0xff] }
 0x15b   :  { %789 = vmatpush2.msra.mxu0 %v402_v47  ;;  %860 = vmatpush2.msra.mxu1 %v530_v48  ;;  %v898_v46 = vld [vmem:[#allocation10 + $0x80] sm:$0xff]  ;;  %v1043_v47 = vld [vmem:[#allocation10 + $0x508] sm:$0xff] }
 0x15c   :  { %790 = vmatprep.subr.mxu0 %v399_v51  ;;  %861 = vmatprep.subr.mxu1 %v527_v52  ;;  %v895_v48 = vld [vmem:[#allocation10 + $0x68] sm:$0xff]  ;;  %v1042_v51 = vld [vmem:[#allocation10 + $0x500] sm:$0xff] }
 0x15d   :  { %791 = vmatpush2.msra.mxu0 %v398_v53  ;;  %862 = vmatpush2.msra.mxu1 %v526_v54  ;;  %v894_v52 = vld [vmem:[#allocation10 + $0x60] sm:$0xff]  ;;  %v1039_v53 = vld [vmem:[#allocation10 + $0x4e8] sm:$0xff] }
 0x15e   :  { %792 = vmatprep.subr.mxu0 %v395_v56  ;;  %863 = vmatprep.subr.mxu1 %v523_v57  ;;  %v891_v54 = vld [vmem:[#allocation10 + $0x48] sm:$0xff]  ;;  %v1038_v56 = vld [vmem:[#allocation10 + $0x4e0] sm:$0xff] }
 0x15f   :  { %793 = vmatpush2.msra.mxu0 %v394_v59  ;;  %864 = vmatpush2.msra.mxu1 %v522_v60  ;;  %v890_v57 = vld [vmem:[#allocation10 + $0x40] sm:$0xff]  ;;  %v1035_v59 = vld [vmem:[#allocation10 + $0x4c8] sm:$0xff] }
 0x160   :  { %794 = vmatprep.subr.mxu0 %v391_v61  ;;  %865 = vmatprep.subr.mxu1 %v519_v62  ;;  %v887_v60 = vld [vmem:[#allocation10 + $0x28] sm:$0xff]  ;;  %v1034_v61 = vld [vmem:[#allocation10 + $0x4c0] sm:$0xff] }
 0x161   :  { %795 = vmatpush2.msra.mxu0 %v390_v63  ;;  %866 = vmatpush2.msra.mxu1 %v518_v0  ;;  %v886_v62 = vld [vmem:[#allocation10 + $0x20] sm:$0xff]  ;;  %v1031_v63 = vld [vmem:[#allocation10 + $0x4a8] sm:$0xff] }
 0x162   :  { %796 = vmatprep.subr.mxu0 %v387_v1  ;;  %867 = vmatprep.subr.mxu1 %v515_v2  ;;  %v883_v0 = vld [vmem:[#allocation10 + $0x8] sm:$0xff]  ;;  %v1030_v1 = vld [vmem:[#allocation10 + $0x4a0] sm:$0xff] }
 0x163   :  { %797 = vmatpush2.msra.mxu0 %v386_v3  ;;  %868 = vmatpush2.msra.mxu1 %v514_v4  ;;  %v882_v2 = vld [vmem:[#allocation10] sm:$0xff]  ;;  %v1027_v3 = vld [vmem:[#allocation10 + $0x488] sm:$0xff] }
 0x164   :  { %798 = vmatprep.subr.mxu0 %v383_v5  ;;  %869 = vmatprep.subr.mxu1 %v511_v6  ;;  %v1007_v4 = vld [vmem:[#allocation10 + $0x3e8] sm:$0xff]  ;;  %v1026_v5 = vld [vmem:[#allocation10 + $0x480] sm:$0xff] }
 0x165   :  { %799 = vmatpush2.msra.mxu0 %v382_v7  ;;  %870 = vmatpush2.msra.mxu1 %v510_v8  ;;  %v1006_v6 = vld [vmem:[#allocation10 + $0x3e0] sm:$0xff]  ;;  %v1023_v7 = vld [vmem:[#allocation10 + $0x468] sm:$0xff] }
 0x166   :  { %801 = vmatmul.mubr.f32.vlgmr.msra.gmra.mxu0 %v312_v58  ;;  %872 = vmatmul.mubr.f32.vlgmr.msra.gmra.mxu1 %v314_v55  ;;  %v923_v58 = vld [vmem:[#allocation10 + $0x148] sm:$0xff]  ;;  %v922_v55 = vld [vmem:[#allocation10 + $0x140] sm:$0xff] }
 0x167   :  { %1160 = vmatprep.subr.mxu0 %v943_v9  ;;  %1231 = vmatprep.subr.mxu1 %v1071_v50  ;;  %v1003_v8 = vld [vmem:[#allocation10 + $0x3c8] sm:$0xff]  ;;  %v1022_v9 = vld [vmem:[#allocation10 + $0x460] sm:$0xff] }
 0x168   :  { %1161 = vmatpush1.msra.mxu0 %v942_v10  ;;  %1232 = vmatpush1.msra.mxu1 %v1070_v49  ;;  %v1002_v10 = vld [vmem:[#allocation10 + $0x3c0] sm:$0xff]  ;;  %v1011_v50 = vld [vmem:[#allocation10 + $0x408] sm:$0xff] }
 0x169   :  { %1162 = vmatprep.subr.mxu0 %v939_v11  ;;  %1233 = vmatprep.subr.mxu1 %v1067_v19  ;;  %v1019_v11 = vld [vmem:[#allocation10 + $0x448] sm:$0xff]  ;;  %v1010_v49 = vld [vmem:[#allocation10 + $0x400] sm:$0xff] }
 0x16a   :  { %1163 = vmatpush1.msra.mxu0 %v938_v12  ;;  %1234 = vmatpush1.msra.mxu1 %v1066_v21  ;;  %v999_v12 = vld [vmem:[#allocation10 + $0x3a8] sm:$0xff]  ;;  %v1134_v21 = vld [vmem:[#allocation10 + $0x7e0] sm:$0xff] }
 0x16b   :  { %1164 = vmatprep.subr.mxu0 %v935_v13  ;;  %1235 = vmatprep.subr.mxu1 %v1063_v23  ;;  %v1018_v13 = vld [vmem:[#allocation10 + $0x440] sm:$0xff]  ;;  %v1135_v19 = vld [vmem:[#allocation10 + $0x7e8] sm:$0xff] }
 0x16c   :  { %1165 = vmatpush1.msra.mxu0 %v934_v14  ;;  %1236 = vmatpush1.msra.mxu1 %v1062_v25  ;;  %v998_v14 = vld [vmem:[#allocation10 + $0x3a0] sm:$0xff]  ;;  %v1131_v23 = vld [vmem:[#allocation10 + $0x7c8] sm:$0xff] }
 0x16d   :  { %1166 = vmatprep.subr.mxu0 %v931_v15  ;;  %1237 = vmatprep.subr.mxu1 %v1059_v27  ;;  %v1015_v15 = vld [vmem:[#allocation10 + $0x428] sm:$0xff]  ;;  %v1130_v25 = vld [vmem:[#allocation10 + $0x7c0] sm:$0xff] }
 0x16e   :  { %1167 = vmatpush1.msra.mxu0 %v930_v16  ;;  %1238 = vmatpush1.msra.mxu1 %v1058_v29  ;;  %v995_v16 = vld [vmem:[#allocation10 + $0x388] sm:$0xff]  ;;  %v1126_v29 = vld [vmem:[#allocation10 + $0x7a0] sm:$0xff] }
 0x16f   :  { %1168 = vmatprep.subr.mxu0 %v927_v17  ;;  %1239 = vmatprep.subr.mxu1 %v1055_v31  ;;  %v1014_v17 = vld [vmem:[#allocation10 + $0x420] sm:$0xff]  ;;  %v1127_v27 = vld [vmem:[#allocation10 + $0x7a8] sm:$0xff] }
 0x170   :  { %1169 = vmatpush1.msra.mxu0 %v926_v18  ;;  %1240 = vmatpush1.msra.mxu1 %v1054_v33  ;;  %v994_v18 = vld [vmem:[#allocation10 + $0x380] sm:$0xff]  ;;  %v1123_v31 = vld [vmem:[#allocation10 + $0x788] sm:$0xff] }
 0x171   :  { %1170 = vmatprep.subr.mxu0 %v923_v58  ;;  %1241 = vmatprep.subr.mxu1 %v1051_v35  ;;  %v991_v58 = vld [vmem:[#allocation10 + $0x368] sm:$0xff]  ;;  %v1122_v33 = vld [vmem:[#allocation10 + $0x780] sm:$0xff] }
 0x172   :  { %1171 = vmatpush1.msra.mxu0 %v922_v55  ;;  %1242 = vmatpush1.msra.mxu1 %v1050_v37  ;;  %v990_v55 = vld [vmem:[#allocation10 + $0x360] sm:$0xff]  ;;  %v1119_v35 = vld [vmem:[#allocation10 + $0x768] sm:$0xff] }
 0x173   :  { %1172 = vmatprep.subr.mxu0 %v919_v20  ;;  %1243 = vmatprep.subr.mxu1 %v1047_v43  ;;  %v987_v20 = vld [vmem:[#allocation10 + $0x348] sm:$0xff]  ;;  %v1118_v37 = vld [vmem:[#allocation10 + $0x760] sm:$0xff] }
 0x174   :  { %1173 = vmatpush1.msra.mxu0 %v918_v22  ;;  %1244 = vmatpush1.msra.mxu1 %v1046_v45  ;;  %v986_v22 = vld [vmem:[#allocation10 + $0x340] sm:$0xff]  ;;  %v1115_v43 = vld [vmem:[#allocation10 + $0x748] sm:$0xff] }
 0x175   :  { %1174 = vmatprep.subr.mxu0 %v915_v24  ;;  %1245 = vmatprep.subr.mxu1 %v1043_v47  ;;  %v983_v24 = vld [vmem:[#allocation10 + $0x328] sm:$0xff]  ;;  %v1114_v45 = vld [vmem:[#allocation10 + $0x740] sm:$0xff] }
 0x176   :  { %1175 = vmatpush1.msra.mxu0 %v914_v26  ;;  %1246 = vmatpush1.msra.mxu1 %v1042_v51  ;;  %v982_v26 = vld [vmem:[#allocation10 + $0x320] sm:$0xff]  ;;  %v1111_v47 = vld [vmem:[#allocation10 + $0x728] sm:$0xff] }
 0x177   :  { %1176 = vmatprep.subr.mxu0 %v911_v28  ;;  %1247 = vmatprep.subr.mxu1 %v1039_v53  ;;  %v979_v28 = vld [vmem:[#allocation10 + $0x308] sm:$0xff]  ;;  %v1110_v51 = vld [vmem:[#allocation10 + $0x720] sm:$0xff] }
 0x178   :  { %1177 = vmatpush1.msra.mxu0 %v910_v30  ;;  %1248 = vmatpush1.msra.mxu1 %v1038_v56  ;;  %v978_v30 = vld [vmem:[#allocation10 + $0x300] sm:$0xff]  ;;  %v1107_v53 = vld [vmem:[#allocation10 + $0x708] sm:$0xff] }
 0x179   :  { %1178 = vmatprep.subr.mxu0 %v907_v32  ;;  %1249 = vmatprep.subr.mxu1 %v1035_v59  ;;  %v975_v32 = vld [vmem:[#allocation10 + $0x2e8] sm:$0xff]  ;;  %v1106_v56 = vld [vmem:[#allocation10 + $0x700] sm:$0xff] }
 0x17a   :  { %1179 = vmatpush1.msra.mxu0 %v906_v34  ;;  %1250 = vmatpush1.msra.mxu1 %v1034_v61  ;;  %v974_v34 = vld [vmem:[#allocation10 + $0x2e0] sm:$0xff]  ;;  %v1103_v59 = vld [vmem:[#allocation10 + $0x6e8] sm:$0xff] }
 0x17b   :  { %1180 = vmatprep.subr.mxu0 %v903_v36  ;;  %1251 = vmatprep.subr.mxu1 %v1031_v63  ;;  %v971_v36 = vld [vmem:[#allocation10 + $0x2c8] sm:$0xff]  ;;  %v1102_v61 = vld [vmem:[#allocation10 + $0x6e0] sm:$0xff] }
 0x17c   :  { %1181 = vmatpush1.msra.mxu0 %v902_v40  ;;  %1252 = vmatpush1.msra.mxu1 %v1030_v1  ;;  %v970_v40 = vld [vmem:[#allocation10 + $0x2c0] sm:$0xff]  ;;  %v1099_v63 = vld [vmem:[#allocation10 + $0x6c8] sm:$0xff] }
 0x17d   :  { %1182 = vmatprep.subr.mxu0 %v899_v44  ;;  %1253 = vmatprep.subr.mxu1 %v1027_v3  ;;  %v967_v44 = vld [vmem:[#allocation10 + $0x2a8] sm:$0xff]  ;;  %v1098_v1 = vld [vmem:[#allocation10 + $0x6c0] sm:$0xff] }
 0x17e   :  { %1183 = vmatpush1.msra.mxu0 %v898_v46  ;;  %1254 = vmatpush1.msra.mxu1 %v1026_v5  ;;  %v966_v46 = vld [vmem:[#allocation10 + $0x2a0] sm:$0xff]  ;;  %v1095_v3 = vld [vmem:[#allocation10 + $0x6a8] sm:$0xff] }
 0x17f   :  { %1184 = vmatprep.subr.mxu0 %v895_v48  ;;  %1255 = vmatprep.subr.mxu1 %v1023_v7  ;;  %v963_v48 = vld [vmem:[#allocation10 + $0x288] sm:$0xff]  ;;  %v1094_v5 = vld [vmem:[#allocation10 + $0x6a0] sm:$0xff] }
 0x180   :  { %1185 = vmatpush1.msra.mxu0 %v894_v52  ;;  %1256 = vmatpush1.msra.mxu1 %v1022_v9  ;;  %v962_v52 = vld [vmem:[#allocation10 + $0x280] sm:$0xff]  ;;  %v1091_v7 = vld [vmem:[#allocation10 + $0x688] sm:$0xff] }
 0x181   :  { %1186 = vmatprep.subr.mxu0 %v891_v54  ;;  %1257 = vmatprep.subr.mxu1 %v1019_v11  ;;  %v959_v54 = vld [vmem:[#allocation10 + $0x268] sm:$0xff]  ;;  %v1090_v9 = vld [vmem:[#allocation10 + $0x680] sm:$0xff] }
 0x182   :  { %1187 = vmatpush1.msra.mxu0 %v890_v57  ;;  %1258 = vmatpush1.msra.mxu1 %v1018_v13  ;;  %v958_v57 = vld [vmem:[#allocation10 + $0x260] sm:$0xff] }
 0x183   :  { %1188 = vmatprep.subr.mxu0 %v887_v60  ;;  %1259 = vmatprep.subr.mxu1 %v1015_v15  ;;  %v955_v60 = vld [vmem:[#allocation10 + $0x248] sm:$0xff]  ;;  %v1086_v11 = vld [vmem:[#allocation10 + $0x660] sm:$0xff] }
 0x184   :  { %1189 = vmatpush1.msra.mxu0 %v886_v62  ;;  %1260 = vmatpush1.msra.mxu1 %v1014_v17  ;;  %v954_v62 = vld [vmem:[#allocation10 + $0x240] sm:$0xff] }
 0x185   :  { %1190 = vmatprep.subr.mxu0 %v883_v0  ;;  %1261 = vmatprep.subr.mxu1 %v1011_v50  ;;  %v951_v0 = vld [vmem:[#allocation10 + $0x228] sm:$0xff]  ;;  %v1082_v13 = vld [vmem:[#allocation10 + $0x640] sm:$0xff]  ;;  %v2031_v50 = vld [vmem:[%s2072_s4] sm:$0xf] }
 0x186   :  { %1191 = vmatpush1.msra.mxu0 %v882_v2  ;;  %1262 = vmatpush1.msra.mxu1 %v1010_v49  ;;  %v950_v2 = vld [vmem:[#allocation10 + $0x220] sm:$0xff]  ;;  %v581_v49 = vrot.slane %v2031_v50, %v2006_v41 }
 0x187   :  { %1192 = vmatprep.subr.mxu0 %v1007_v4  ;;  %1263 = vmatprep.subr.mxu1 %v1135_v19  ;;  %v947_v4 = vld [vmem:[#allocation10 + $0x208] sm:$0xff]  ;;  %v1078_v15 = vld [vmem:[#allocation10 + $0x620] sm:$0xff] }
 0x188   :  { %1193 = vmatpush2.msra.mxu0 %v1006_v6  ;;  %1264 = vmatpush2.msra.mxu1 %v1134_v21  ;;  %v946_v6 = vld [vmem:[#allocation10 + $0x200] sm:$0xff] }
 0x189   :  { %1194 = vmatprep.subr.mxu0 %v1003_v8  ;;  %1265 = vmatprep.subr.mxu1 %v1131_v23  ;;  %v945_v8 = vld [vmem:[#allocation10 + $0x1f8] sm:$0xff]  ;;  %v1074_v17 = vld [vmem:[#allocation10 + $0x600] sm:$0xff] }
 0x18a   :  { %1195 = vmatpush2.msra.mxu0 %v1002_v10  ;;  %1266 = vmatpush2.msra.mxu1 %v1130_v25  ;;  %v1087_v10 = vld [vmem:[#allocation10 + $0x668] sm:$0xff] }
 0x18b   :  { %1196 = vmatprep.subr.mxu0 %v999_v12  ;;  %1267 = vmatprep.subr.mxu1 %v1127_v27  ;;  %v1083_v12 = vld [vmem:[#allocation10 + $0x648] sm:$0xff] }
 0x18c   :  { %1197 = vmatpush2.msra.mxu0 %v998_v14  ;;  %1268 = vmatpush2.msra.mxu1 %v1126_v29  ;;  %v1079_v14 = vld [vmem:[#allocation10 + $0x628] sm:$0xff]  ;;  %v941_v29 = vld [vmem:[#allocation10 + $0x1d8] sm:$0xff] }
 0x18d   :  { %1198 = vmatprep.subr.mxu0 %v995_v16  ;;  %1269 = vmatprep.subr.mxu1 %v1123_v31  ;;  %v1075_v16 = vld [vmem:[#allocation10 + $0x608] sm:$0xff]  ;;  %v937_v31 = vld [vmem:[#allocation10 + $0x1b8] sm:$0xff] }
 0x18e   :  { %1199 = vmatpush2.msra.mxu0 %v994_v18  ;;  %1270 = vmatpush2.msra.mxu1 %v1122_v33  ;;  %v1073_v18 = vld [vmem:[#allocation10 + $0x5f8] sm:$0xff] }
 0x18f   :  { %1200 = vmatprep.subr.mxu0 %v991_v58  ;;  %1271 = vmatprep.subr.mxu1 %v1119_v35  ;;  %v577_v58 = vrot.slane %v2031_v50, %v2004_v39  ;;  %v933_v33 = vld [vmem:[#allocation10 + $0x198] sm:$0xff] }
 0x190   :  { %1201 = vmatpush2.msra.mxu0 %v990_v55  ;;  %1272 = vmatpush2.msra.mxu1 %v1118_v37  ;;  %v929_v35 = vld [vmem:[#allocation10 + $0x178] sm:$0xff] }
 0x191   :  { %1202 = vmatprep.subr.mxu0 %v987_v20  ;;  %1273 = vmatprep.subr.mxu1 %v1115_v43  ;;  %v925_v37 = vld [vmem:[#allocation10 + $0x158] sm:$0xff] }
 0x192   :  { %1203 = vmatpush2.msra.mxu0 %v986_v22  ;;  %1274 = vmatpush2.msra.mxu1 %v1114_v45  ;;  %v921_v43 = vld [vmem:[#allocation10 + $0x138] sm:$0xff] }
 0x193   :  { %1204 = vmatprep.subr.mxu0 %v983_v24  ;;  %1275 = vmatprep.subr.mxu1 %v1111_v47  ;;  %v917_v45 = vld [vmem:[#allocation10 + $0x118] sm:$0xff] }
 0x194   :  { %1205 = vmatpush2.msra.mxu0 %v982_v26  ;;  %1276 = vmatpush2.msra.mxu1 %v1110_v51  ;;  %v913_v47 = vld [vmem:[#allocation10 + $0xf8] sm:$0xff] }
 0x195   :  { %1206 = vmatprep.subr.mxu0 %v979_v28  ;;  %1277 = vmatprep.subr.mxu1 %v1107_v53  ;;  %v944_v28 = vld [vmem:[#allocation10 + $0x1f0] sm:$0xff]  ;;  %v909_v51 = vld [vmem:[#allocation10 + $0xd8] sm:$0xff] }
 0x196   :  { %1207 = vmatpush2.msra.mxu0 %v978_v30  ;;  %1278 = vmatpush2.msra.mxu1 %v1106_v56  ;;  %v940_v30 = vld [vmem:[#allocation10 + $0x1d0] sm:$0xff]  ;;  %v905_v53 = vld [vmem:[#allocation10 + $0xb8] sm:$0xff] }
 0x197   :  { %1208 = vmatprep.subr.mxu0 %v975_v32  ;;  %1279 = vmatprep.subr.mxu1 %v1103_v59  ;;  %v936_v32 = vld [vmem:[#allocation10 + $0x1b0] sm:$0xff]  ;;  %v901_v56 = vld [vmem:[#allocation10 + $0x98] sm:$0xff] }
 0x198   :  { %1209 = vmatpush2.msra.mxu0 %v974_v34  ;;  %1280 = vmatpush2.msra.mxu1 %v1102_v61  ;;  %v932_v34 = vld [vmem:[#allocation10 + $0x190] sm:$0xff]  ;;  %v897_v59 = vld [vmem:[#allocation10 + $0x78] sm:$0xff] }
 0x199   :  { %1210 = vmatprep.subr.mxu0 %v971_v36  ;;  %1281 = vmatprep.subr.mxu1 %v1099_v63  ;;  %v928_v36 = vld [vmem:[#allocation10 + $0x170] sm:$0xff]  ;;  %v893_v61 = vld [vmem:[#allocation10 + $0x58] sm:$0xff] }
 0x19a   :  { %1211 = vmatpush2.msra.mxu0 %v970_v40  ;;  %1282 = vmatpush2.msra.mxu1 %v1098_v1  ;;  %v924_v40 = vld [vmem:[#allocation10 + $0x150] sm:$0xff]  ;;  %v889_v63 = vld [vmem:[#allocation10 + $0x38] sm:$0xff] }
 0x19b   :  { %1212 = vmatprep.subr.mxu0 %v967_v44  ;;  %1283 = vmatprep.subr.mxu1 %v1095_v3  ;;  %v920_v44 = vld [vmem:[#allocation10 + $0x130] sm:$0xff]  ;;  %v885_v1 = vld [vmem:[#allocation10 + $0x18] sm:$0xff] }
 0x19c   :  { %1213 = vmatpush2.msra.mxu0 %v966_v46  ;;  %1284 = vmatpush2.msra.mxu1 %v1094_v5  ;;  %v916_v46 = vld [vmem:[#allocation10 + $0x110] sm:$0xff]  ;;  %v1009_v3 = vld [vmem:[#allocation10 + $0x3f8] sm:$0xff] }
 0x19d   :  { %1214 = vmatprep.subr.mxu0 %v963_v48  ;;  %1285 = vmatprep.subr.mxu1 %v1091_v7  ;;  %v912_v48 = vld [vmem:[#allocation10 + $0xf0] sm:$0xff]  ;;  %v1005_v5 = vld [vmem:[#allocation10 + $0x3d8] sm:$0xff] }
 0x19e   :  { %1215 = vmatpush2.msra.mxu0 %v962_v52  ;;  %1286 = vmatpush2.msra.mxu1 %v1090_v9  ;;  %v908_v52 = vld [vmem:[#allocation10 + $0xd0] sm:$0xff]  ;;  %v1001_v7 = vld [vmem:[#allocation10 + $0x3b8] sm:$0xff] }
 0x19f   :  { %1216 = vmatprep.subr.mxu0 %v959_v54  ;;  %1287 = vmatprep.subr.mxu1 %v1087_v10  ;;  %v904_v54 = vld [vmem:[#allocation10 + $0xb0] sm:$0xff]  ;;  %v997_v9 = vld [vmem:[#allocation10 + $0x398] sm:$0xff] }
 0x1a0   :  { %1217 = vmatpush2.msra.mxu0 %v958_v57  ;;  %1288 = vmatpush2.msra.mxu1 %v1086_v11  ;;  %v900_v57 = vld [vmem:[#allocation10 + $0x90] sm:$0xff]  ;;  %v993_v11 = vld [vmem:[#allocation10 + $0x378] sm:$0xff] }
 0x1a1   :  { %1218 = vmatprep.subr.mxu0 %v955_v60  ;;  %1289 = vmatprep.subr.mxu1 %v1083_v12  ;;  %v896_v60 = vld [vmem:[#allocation10 + $0x70] sm:$0xff] }
 0x1a2   :  { %1219 = vmatpush2.msra.mxu0 %v954_v62  ;;  %1290 = vmatpush2.msra.mxu1 %v1082_v13  ;;  %v892_v62 = vld [vmem:[#allocation10 + $0x50] sm:$0xff]  ;;  %v989_v13 = vld [vmem:[#allocation10 + $0x358] sm:$0xff] }
 0x1a3   :  { %1220 = vmatprep.subr.mxu0 %v951_v0  ;;  %1291 = vmatprep.subr.mxu1 %v1079_v14  ;;  %v888_v0 = vld [vmem:[#allocation10 + $0x30] sm:$0xff] }
 0x1a4   :  { %1221 = vmatpush2.msra.mxu0 %v950_v2  ;;  %1292 = vmatpush2.msra.mxu1 %v1078_v15  ;;  %v884_v2 = vld [vmem:[#allocation10 + $0x10] sm:$0xff]  ;;  %v985_v15 = vld [vmem:[#allocation10 + $0x338] sm:$0xff] }
 0x1a5   :  { %1222 = vmatprep.subr.mxu0 %v947_v4  ;;  %1293 = vmatprep.subr.mxu1 %v1075_v16  ;;  %v1008_v4 = vld [vmem:[#allocation10 + $0x3f0] sm:$0xff] }
 0x1a6   :  { %1223 = vmatpush2.msra.mxu0 %v946_v6  ;;  %1294 = vmatpush2.msra.mxu1 %v1074_v17  ;;  %v1004_v6 = vld [vmem:[#allocation10 + $0x3d0] sm:$0xff]  ;;  %v981_v17 = vld [vmem:[#allocation10 + $0x318] sm:$0xff] }
 0x1a7   :  { %1302 = vmatprep.subr.mxu0 %v945_v8  ;;  %1373 = vmatprep.subr.mxu1 %v1073_v18  ;;  %v1000_v8 = vld [vmem:[#allocation10 + $0x3b0] sm:$0xff] }
 0x1a8   :  { %v996_v10 = vld [vmem:[#allocation10 + $0x390] sm:$0xff] }
 0x1a9   :  { %v992_v12 = vld [vmem:[#allocation10 + $0x370] sm:$0xff] }
 0x1aa   :  { %v988_v14 = vld [vmem:[#allocation10 + $0x350] sm:$0xff] }
 0x1ab   :  { %v984_v16 = vld [vmem:[#allocation10 + $0x330] sm:$0xff] }
 0x1ac   :  { %v980_v18 = vld [vmem:[#allocation10 + $0x310] sm:$0xff] }
 0x1e5   :  { %v660_v55 = vpop.f32.mrf.mxu0  ;;  %v731_v19 = vpop.f32.mrf.mxu1 }
 0x1e6   :  { %v661_v20 = vadd.f32 %v660_v55, %v577_v58  ;;  %v977_v58 = vld [vmem:[#allocation10 + $0x2f8] sm:$0xff] }
 0x1e7   :  { %v662_v21 = vpop.f32.mrf.mxu0  ;;  %v733_v24 = vpop.f32.mrf.mxu1  ;;  %v973_v55 = vld [vmem:[#allocation10 + $0x2d8] sm:$0xff] }
 0x1e8   :  { %v663_v22 = vadd.f32 %v662_v21, %v581_v49  ;;  %v2037_v23 = vadd.f32 %v731_v19, %v661_v20  ;;  %v976_v49 = vld [vmem:[#allocation10 + $0x2f0] sm:$0xff]  ;;  %v969_v20 = vld [vmem:[#allocation10 + $0x2b8] sm:$0xff] }
 0x1e9   :  { %v972_v19 = vld [vmem:[#allocation10 + $0x2d0] sm:$0xff] }
 0x1ea   :  { %v734_v25 = vadd.f32 %v733_v24, %v663_v22  ;;  %v878_v27 = vmax.f32 %v2037_v23, 0.0  ;;  %v968_v21 = vld [vmem:[#allocation10 + $0x2b0] sm:$0xff]  ;;  %v965_v22 = vld [vmem:[#allocation10 + $0x298] sm:$0xff]  ;;  %v585_v24 = vrot.slane %v2031_v50, %v2002_v38 }
 0x1eb   :  { %v1060_v23 = vld [vmem:[#allocation10 + $0x590] sm:$0xff] }
 0x1ec   :  { %v879_v26 = vmax.f32 %v734_v25, 0.0  ;;  %v964_v25 = vld [vmem:[#allocation10 + $0x290] sm:$0xff] }
 0x1ee   :  { %1224 = vmatprep.mubr.f32.mxu0 %v879_v26 }
 0x1ef   :  { %1225 = vmatmul.mubr.f32.vlgmr.msra.gmra.mxu0 %v878_v27 }
 0x1f0   :  { %1303 = vmatpush1.msra.mxu0 %v944_v28  ;;  %1366 = vmatprep.mubr.f32.mxu0 %v879_v26  ;;  %v961_v26 = vld [vmem:[#allocation10 + $0x278] sm:$0xff]  ;;  %v589_v28 = vrot.slane %v2031_v50, %v2008_v42 }
 0x1f1   :  { %1304 = vmatprep.subr.mxu0 %v941_v29  ;;  %v960_v29 = vld [vmem:[#allocation10 + $0x270] sm:$0xff] }
 0x1f2   :  { %1305 = vmatpush1.msra.mxu0 %v940_v30 }
 0x1f3   :  { %1306 = vmatprep.subr.mxu0 %v937_v31 }
 0x1f4   :  { %1307 = vmatpush1.msra.mxu0 %v936_v32  ;;  %v957_v32 = vld [vmem:[#allocation10 + $0x258] sm:$0xff] }
 0x1f5   :  { %1308 = vmatprep.subr.mxu0 %v933_v33 }
 0x1f6   :  { %1309 = vmatpush1.msra.mxu0 %v932_v34  ;;  %v956_v34 = vld [vmem:[#allocation10 + $0x250] sm:$0xff] }
 0x1f7   :  { %1310 = vmatprep.subr.mxu0 %v929_v35 }
 0x1f8   :  { %1311 = vmatpush1.msra.mxu0 %v928_v36  ;;  %v953_v36 = vld [vmem:[#allocation10 + $0x238] sm:$0xff] }
 0x1f9   :  { %1312 = vmatprep.subr.mxu0 %v925_v37 }
 0x1fa   :  { %1313 = vmatpush1.msra.mxu0 %v924_v40  ;;  %v952_v40 = vld [vmem:[#allocation10 + $0x230] sm:$0xff] }
 0x1fb   :  { %1314 = vmatprep.subr.mxu0 %v921_v43 }
 0x1fc   :  { %1315 = vmatpush1.msra.mxu0 %v920_v44 }
 0x1fd   :  { %1316 = vmatprep.subr.mxu0 %v917_v45  ;;  %v949_v45 = vld [vmem:[#allocation10 + $0x218] sm:$0xff] }
 0x1fe   :  { %1317 = vmatpush1.msra.mxu0 %v916_v46  ;;  %v948_v46 = vld [vmem:[#allocation10 + $0x210] sm:$0xff] }
 0x1ff   :  { %1318 = vmatprep.subr.mxu0 %v913_v47 }
 0x200   :  { %1319 = vmatpush1.msra.mxu0 %v912_v48 }
 0x201   :  { %1320 = vmatprep.subr.mxu0 %v909_v51  ;;  %v1072_v51 = vld [vmem:[#allocation10 + $0x5f0] sm:$0xff] }
 0x202   :  { %1321 = vmatpush1.msra.mxu0 %v908_v52  ;;  %v1069_v52 = vld [vmem:[#allocation10 + $0x5d8] sm:$0xff] }
 0x203   :  { %1322 = vmatprep.subr.mxu0 %v905_v53  ;;  %v1068_v53 = vld [vmem:[#allocation10 + $0x5d0] sm:$0xff] }
 0x204   :  { %1323 = vmatpush1.msra.mxu0 %v904_v54  ;;  %v1065_v54 = vld [vmem:[#allocation10 + $0x5b8] sm:$0xff] }
 0x205   :  { %1324 = vmatprep.subr.mxu0 %v901_v56  ;;  %v1064_v56 = vld [vmem:[#allocation10 + $0x5b0] sm:$0xff] }
 0x206   :  { %1325 = vmatpush1.msra.mxu0 %v900_v57  ;;  %v1479_v57 = vld [vmem:[#allocation11 + $0xf8] sm:$0xff] }
 0x207   :  { %1326 = vmatprep.subr.mxu0 %v897_v59  ;;  %v1463_v59 = vld [vmem:[#allocation11 + $0x78] sm:$0xff] }
 0x208   :  { %1327 = vmatpush1.msra.mxu0 %v896_v60  ;;  %v1478_v60 = vld [vmem:[#allocation11 + $0xf0] sm:$0xff] }
 0x209   :  { %1328 = vmatprep.subr.mxu0 %v893_v61  ;;  %v1061_v61 = vld [vmem:[#allocation10 + $0x598] sm:$0xff] }
 0x20a   :  { %1329 = vmatpush1.msra.mxu0 %v892_v62  ;;  %v1462_v62 = vld [vmem:[#allocation11 + $0x70] sm:$0xff] }
 0x20b   :  { %1330 = vmatprep.subr.mxu0 %v889_v63  ;;  %v1057_v63 = vld [vmem:[#allocation10 + $0x578] sm:$0xff] }
 0x20c   :  { %1331 = vmatpush1.msra.mxu0 %v888_v0  ;;  %v1461_v0 = vld [vmem:[#allocation11 + $0x68] sm:$0xff] }
 0x20d   :  { %1332 = vmatprep.subr.mxu0 %v885_v1  ;;  %v1056_v1 = vld [vmem:[#allocation10 + $0x570] sm:$0xff] }
 0x20e   :  { %1333 = vmatpush1.msra.mxu0 %v884_v2  ;;  %v1476_v2 = vld [vmem:[#allocation11 + $0xe0] sm:$0xff] }
 0x20f   :  { %1334 = vmatprep.subr.mxu0 %v1009_v3  ;;  %v1053_v3 = vld [vmem:[#allocation10 + $0x558] sm:$0xff] }
 0x210   :  { %1335 = vmatpush2.msra.mxu0 %v1008_v4  ;;  %v1460_v4 = vld [vmem:[#allocation11 + $0x60] sm:$0xff] }
 0x211   :  { %1336 = vmatprep.subr.mxu0 %v1005_v5  ;;  %v1052_v5 = vld [vmem:[#allocation10 + $0x550] sm:$0xff] }
 0x212   :  { %1337 = vmatpush2.msra.mxu0 %v1004_v6  ;;  %v1475_v6 = vld [vmem:[#allocation11 + $0xd8] sm:$0xff] }
 0x213   :  { %1338 = vmatprep.subr.mxu0 %v1001_v7  ;;  %v1049_v7 = vld [vmem:[#allocation10 + $0x538] sm:$0xff] }
 0x214   :  { %1339 = vmatpush2.msra.mxu0 %v1000_v8  ;;  %v1459_v8 = vld [vmem:[#allocation11 + $0x58] sm:$0xff] }
 0x215   :  { %1340 = vmatprep.subr.mxu0 %v997_v9  ;;  %v1048_v9 = vld [vmem:[#allocation10 + $0x530] sm:$0xff] }
 0x216   :  { %1341 = vmatpush2.msra.mxu0 %v996_v10  ;;  %v1474_v10 = vld [vmem:[#allocation11 + $0xd0] sm:$0xff] }
 0x217   :  { %1342 = vmatprep.subr.mxu0 %v993_v11  ;;  %v1045_v11 = vld [vmem:[#allocation10 + $0x518] sm:$0xff] }
 0x218   :  { %1343 = vmatpush2.msra.mxu0 %v992_v12  ;;  %v1458_v12 = vld [vmem:[#allocation11 + $0x50] sm:$0xff] }
 0x219   :  { %1344 = vmatprep.subr.mxu0 %v989_v13  ;;  %v1044_v13 = vld [vmem:[#allocation10 + $0x510] sm:$0xff] }
 0x21a   :  { %1345 = vmatpush2.msra.mxu0 %v988_v14  ;;  %v1473_v14 = vld [vmem:[#allocation11 + $0xc8] sm:$0xff] }
 0x21b   :  { %1346 = vmatprep.subr.mxu0 %v985_v15  ;;  %v1041_v15 = vld [vmem:[#allocation10 + $0x4f8] sm:$0xff] }
 0x21c   :  { %1347 = vmatpush2.msra.mxu0 %v984_v16  ;;  %v1457_v16 = vld [vmem:[#allocation11 + $0x48] sm:$0xff] }
 0x21d   :  { %1348 = vmatprep.subr.mxu0 %v981_v17  ;;  %v1040_v17 = vld [vmem:[#allocation10 + $0x4f0] sm:$0xff] }
 0x21e   :  { %1349 = vmatpush2.msra.mxu0 %v980_v18  ;;  %v1472_v18 = vld [vmem:[#allocation11 + $0xc0] sm:$0xff] }
 0x21f   :  { %1350 = vmatprep.subr.mxu0 %v977_v58  ;;  %v1037_v58 = vld [vmem:[#allocation10 + $0x4d8] sm:$0xff] }
 0x220   :  { %1351 = vmatpush2.msra.mxu0 %v976_v49  ;;  %v1456_v49 = vld [vmem:[#allocation11 + $0x40] sm:$0xff] }
 0x221   :  { %1352 = vmatprep.subr.mxu0 %v973_v55  ;;  %v1036_v55 = vld [vmem:[#allocation10 + $0x4d0] sm:$0xff] }
 0x222   :  { %1353 = vmatpush2.msra.mxu0 %v972_v19  ;;  %v1471_v19 = vld [vmem:[#allocation11 + $0xb8] sm:$0xff] }
 0x223   :  { %1354 = vmatprep.subr.mxu0 %v969_v20  ;;  %v1033_v20 = vld [vmem:[#allocation10 + $0x4b8] sm:$0xff] }
 0x224   :  { %1355 = vmatpush2.msra.mxu0 %v968_v21  ;;  %v1455_v21 = vld [vmem:[#allocation11 + $0x38] sm:$0xff] }
 0x225   :  { %1356 = vmatprep.subr.mxu0 %v965_v22  ;;  %v1032_v22 = vld [vmem:[#allocation10 + $0x4b0] sm:$0xff] }
 0x226   :  { %v802_v30 = vpop.f32.mrf.mxu0  ;;  %v873_v31 = vpop.f32.mrf.mxu1  ;;  %1357 = vmatpush2.msra.mxu0 %v964_v25  ;;  %v1029_v25 = vld [vmem:[#allocation10 + $0x498] sm:$0xff] }
 0x227   :  { %v803_v33 = vadd.f32 %v802_v30, %v585_v24  ;;  %1358 = vmatprep.subr.mxu0 %v961_v26  ;;  %v1470_v24 = vld [vmem:[#allocation11 + $0xb0] sm:$0xff]  ;;  %v1025_v30 = vld [vmem:[#allocation10 + $0x478] sm:$0xff] }
 0x228   :  { %v804_v35 = vpop.f32.mrf.mxu0  ;;  %1359 = vmatpush2.msra.mxu0 %v960_v29  ;;  %v875_v44 = vpop.f32.mrf.mxu1  ;;  %v1454_v26 = vld [vmem:[#allocation11 + $0x30] sm:$0xff]  ;;  %v1469_v29 = vld [vmem:[#allocation11 + $0xa8] sm:$0xff] }
 0x229   :  { %v805_v37 = vadd.f32 %v804_v35, %v589_v28  ;;  %1360 = vmatprep.subr.mxu0 %v957_v32  ;;  %v2046_v43 = vadd.f32 %v873_v31, %v803_v33  ;;  %v1028_v28 = vld [vmem:[#allocation10 + $0x490] sm:$0xff]  ;;  %v1453_v31 = vld [vmem:[#allocation11 + $0x28] sm:$0xff]  ;;  %v1468_v33 = vld [vmem:[#allocation11 + $0xa0] sm:$0xff] }
 0x22a   :  { %1361 = vmatpush2.msra.mxu0 %v956_v34  ;;  %v1024_v32 = vld [vmem:[#allocation10 + $0x470] sm:$0xff]  ;;  %v1021_v34 = vld [vmem:[#allocation10 + $0x458] sm:$0xff]  ;;  %v1452_v35 = vld [vmem:[#allocation11 + $0x20] sm:$0xff] }
 0x22b   :  { %v876_v50 = vadd.f32 %v875_v44, %v805_v37  ;;  %1362 = vmatprep.subr.mxu0 %v953_v36  ;;  %v880_v48 = vmax.f32 %v2046_v43, 0.0  ;;  %v1020_v36 = vld [vmem:[#allocation10 + $0x450] sm:$0xff]  ;;  %v1017_v37 = vld [vmem:[#allocation10 + $0x438] sm:$0xff] }
 0x22c   :  { %1363 = vmatpush2.msra.mxu0 %v952_v40  ;;  %v1016_v40 = vld [vmem:[#allocation10 + $0x430] sm:$0xff]  ;;  %v1013_v44 = vld [vmem:[#allocation10 + $0x418] sm:$0xff] }
 0x22d   :  { %v881_v47 = vmax.f32 %v876_v50, 0.0  ;;  %1364 = vmatprep.subr.mxu0 %v949_v45  ;;  %v1012_v45 = vld [vmem:[#allocation10 + $0x410] sm:$0xff]  ;;  %v1137_v50 = vld [vmem:[#allocation10 + $0x7f8] sm:$0xff] }
 0x22e   :  { %1365 = vmatpush2.msra.mxu0 %v948_v46  ;;  %v1136_v46 = vld [vmem:[#allocation10 + $0x7f0] sm:$0xff] }
 0x22f   :  { %1295 = vmatprep.mubr.f32.mxu1 %v881_v47  ;;  %1367 = vmatmul.mubr.f32.vlgmr.msra.gmra.mxu0 %v878_v27  ;;  %v1477_v27 = vld [vmem:[#allocation11 + $0xe8] sm:$0xff]  ;;  %v1510_v43 = vld [vmem:[#allocation11 + $0x1f0] sm:$0xff] }
 0x230   :  { %1296 = vmatmul.mubr.f32.vlgmr.msra.gmra.mxu1 %v880_v48  ;;  %1681 = vmatprep.subr.mxu0 %v1479_v57  ;;  %v1121_v57 = vld [vmem:[#allocation10 + $0x778] sm:$0xff] }
 0x231   :  { %1374 = vmatpush1.msra.mxu1 %v1072_v51  ;;  %1437 = vmatprep.mubr.f32.mxu1 %v881_v47  ;;  %v1133_v47 = vld [vmem:[#allocation10 + $0x7d8] sm:$0xff]  ;;  %v1132_v51 = vld [vmem:[#allocation10 + $0x7d0] sm:$0xff] }
 0x232   :  { %1375 = vmatprep.subr.mxu1 %v1069_v52  ;;  %1682 = vmatpush3.msra.mxu0 %v1463_v59  ;;  %v1129_v52 = vld [vmem:[#allocation10 + $0x7b8] sm:$0xff]  ;;  %v1120_v59 = vld [vmem:[#allocation10 + $0x770] sm:$0xff] }
 0x233   :  { %1376 = vmatpush1.msra.mxu1 %v1068_v53  ;;  %1683 = vmatprep.subr.mxu0 %v1478_v60  ;;  %v1128_v53 = vld [vmem:[#allocation10 + $0x7b0] sm:$0xff]  ;;  %v1117_v60 = vld [vmem:[#allocation10 + $0x758] sm:$0xff] }
 0x234   :  { %1377 = vmatprep.subr.mxu1 %v1065_v54  ;;  %1684 = vmatpush3.msra.mxu0 %v1462_v62  ;;  %v1125_v54 = vld [vmem:[#allocation10 + $0x798] sm:$0xff] }
 0x235   :  { %1378 = vmatpush1.msra.mxu1 %v1064_v56  ;;  %1685 = vmatprep.subr.mxu0 %v1477_v27  ;;  %v1124_v56 = vld [vmem:[#allocation10 + $0x790] sm:$0xff]  ;;  %v1113_v62 = vld [vmem:[#allocation10 + $0x738] sm:$0xff] }
 0x236   :  { %1379 = vmatprep.subr.mxu1 %v1061_v61  ;;  %1686 = vmatpush3.msra.mxu0 %v1461_v0  ;;  %v1116_v61 = vld [vmem:[#allocation10 + $0x750] sm:$0xff]  ;;  %v1109_v27 = vld [vmem:[#allocation10 + $0x718] sm:$0xff] }
 0x237   :  { %1380 = vmatpush1.msra.mxu1 %v1060_v23  ;;  %1687 = vmatprep.subr.mxu0 %v1476_v2  ;;  %v1112_v23 = vld [vmem:[#allocation10 + $0x730] sm:$0xff]  ;;  %v1105_v0 = vld [vmem:[#allocation10 + $0x6f8] sm:$0xff] }
 0x238   :  { %1381 = vmatprep.subr.mxu1 %v1057_v63  ;;  %1688 = vmatpush3.msra.mxu0 %v1460_v4  ;;  %v1108_v63 = vld [vmem:[#allocation10 + $0x710] sm:$0xff]  ;;  %v1101_v2 = vld [vmem:[#allocation10 + $0x6d8] sm:$0xff] }
 0x239   :  { %1382 = vmatpush1.msra.mxu1 %v1056_v1  ;;  %1689 = vmatprep.subr.mxu0 %v1475_v6  ;;  %v1104_v1 = vld [vmem:[#allocation10 + $0x6f0] sm:$0xff]  ;;  %v1097_v4 = vld [vmem:[#allocation10 + $0x6b8] sm:$0xff] }
 0x23a   :  { %1383 = vmatprep.subr.mxu1 %v1053_v3  ;;  %1690 = vmatpush3.msra.mxu0 %v1459_v8  ;;  %v1100_v3 = vld [vmem:[#allocation10 + $0x6d0] sm:$0xff]  ;;  %v1093_v6 = vld [vmem:[#allocation10 + $0x698] sm:$0xff] }
 0x23b   :  { %1384 = vmatpush1.msra.mxu1 %v1052_v5  ;;  %1691 = vmatprep.subr.mxu0 %v1474_v10  ;;  %v1096_v5 = vld [vmem:[#allocation10 + $0x6b0] sm:$0xff]  ;;  %v1089_v8 = vld [vmem:[#allocation10 + $0x678] sm:$0xff] }
 0x23c   :  { %1385 = vmatprep.subr.mxu1 %v1049_v7  ;;  %1692 = vmatpush3.msra.mxu0 %v1458_v12  ;;  %v1092_v7 = vld [vmem:[#allocation10 + $0x690] sm:$0xff]  ;;  %v1085_v10 = vld [vmem:[#allocation10 + $0x658] sm:$0xff] }
 0x23d   :  { %1386 = vmatpush1.msra.mxu1 %v1048_v9  ;;  %1693 = vmatprep.subr.mxu0 %v1473_v14  ;;  %v1088_v9 = vld [vmem:[#allocation10 + $0x670] sm:$0xff]  ;;  %v1081_v12 = vld [vmem:[#allocation10 + $0x638] sm:$0xff] }
 0x23e   :  { %1387 = vmatprep.subr.mxu1 %v1045_v11  ;;  %1694 = vmatpush3.msra.mxu0 %v1457_v16  ;;  %v1084_v11 = vld [vmem:[#allocation10 + $0x650] sm:$0xff]  ;;  %v1077_v14 = vld [vmem:[#allocation10 + $0x618] sm:$0xff] }
 0x23f   :  { %1388 = vmatpush1.msra.mxu1 %v1044_v13  ;;  %1695 = vmatprep.subr.mxu0 %v1472_v18  ;;  %v1080_v13 = vld [vmem:[#allocation10 + $0x630] sm:$0xff]  ;;  %v1467_v16 = vld [vmem:[#allocation11 + $0x98] sm:$0xff] }
 0x240   :  { %1389 = vmatprep.subr.mxu1 %v1041_v15  ;;  %1696 = vmatpush3.msra.mxu0 %v1456_v49  ;;  %v1076_v15 = vld [vmem:[#allocation10 + $0x610] sm:$0xff]  ;;  %v1465_v49 = vld [vmem:[#allocation11 + $0x88] sm:$0xff] }
 0x241   :  { %1390 = vmatpush1.msra.mxu1 %v1040_v17  ;;  %1697 = vmatprep.subr.mxu0 %v1471_v19  ;;  %v1451_v17 = vld [vmem:[#allocation11 + $0x18] sm:$0xff]  ;;  %v1466_v18 = vld [vmem:[#allocation11 + $0x90] sm:$0xff]  ;;  %v1464_v19 = vld [vmem:[#allocation11 + $0x80] sm:$0xff] }
 0x242   :  { %1391 = vmatprep.subr.mxu1 %v1037_v58  ;;  %1698 = vmatpush3.msra.mxu0 %v1455_v21  ;;  %v1450_v58 = vld [vmem:[#allocation11 + $0x10] sm:$0xff]  ;;  %v1511_v21 = vld [vmem:[#allocation11 + $0x1f8] sm:$0xff] }
 0x243   :  { %1392 = vmatpush1.msra.mxu1 %v1036_v55  ;;  %1699 = vmatprep.subr.mxu0 %v1470_v24  ;;  %v1449_v55 = vld [vmem:[#allocation11 + $0x8] sm:$0xff] }
 0x244   :  { %1393 = vmatprep.subr.mxu1 %v1033_v20  ;;  %1700 = vmatpush3.msra.mxu0 %v1454_v26  ;;  %v1448_v20 = vld [vmem:[#allocation11] sm:$0xff]  ;;  %v1509_v24 = vld [vmem:[#allocation11 + $0x1e8] sm:$0xff] }
 0x245   :  { %1394 = vmatpush1.msra.mxu1 %v1032_v22  ;;  %1701 = vmatprep.subr.mxu0 %v1469_v29  ;;  %v1495_v22 = vld [vmem:[#allocation11 + $0x178] sm:$0xff]  ;;  %v1508_v26 = vld [vmem:[#allocation11 + $0x1e0] sm:$0xff] }
 0x246   :  { %1395 = vmatprep.subr.mxu1 %v1029_v25  ;;  %1702 = vmatpush3.msra.mxu0 %v1453_v31  ;;  %v1493_v25 = vld [vmem:[#allocation11 + $0x168] sm:$0xff]  ;;  %v1507_v29 = vld [vmem:[#allocation11 + $0x1d8] sm:$0xff]  ;;  %v1506_v31 = vld [vmem:[#allocation11 + $0x1d0] sm:$0xff] }
 0x247   :  { %1396 = vmatpush1.msra.mxu1 %v1028_v28  ;;  %1703 = vmatprep.subr.mxu0 %v1468_v33  ;;  %v1492_v28 = vld [vmem:[#allocation11 + $0x160] sm:$0xff]  ;;  %v1505_v33 = vld [vmem:[#allocation11 + $0x1c8] sm:$0xff] }
 0x248   :  { %1397 = vmatprep.subr.mxu1 %v1025_v30  ;;  %1704 = vmatpush3.msra.mxu0 %v1452_v35  ;;  %v1491_v30 = vld [vmem:[#allocation11 + $0x158] sm:$0xff]  ;;  %v1504_v35 = vld [vmem:[#allocation11 + $0x1c0] sm:$0xff] }
 0x249   :  { %1398 = vmatpush1.msra.mxu1 %v1024_v32  ;;  %1705 = vmatprep.subr.mxu0 %v1467_v16  ;;  %v1490_v32 = vld [vmem:[#allocation11 + $0x150] sm:$0xff] }
 0x24a   :  { %1399 = vmatprep.subr.mxu1 %v1021_v34  ;;  %1706 = vmatpush3.msra.mxu0 %v1451_v17  ;;  %v1489_v34 = vld [vmem:[#allocation11 + $0x148] sm:$0xff] }
 0x24b   :  { %1400 = vmatpush1.msra.mxu1 %v1020_v36  ;;  %1707 = vmatprep.subr.mxu0 %v1466_v18  ;;  %v1488_v36 = vld [vmem:[#allocation11 + $0x140] sm:$0xff] }
 0x24c   :  { %1401 = vmatprep.subr.mxu1 %v1017_v37  ;;  %1708 = vmatpush3.msra.mxu0 %v1450_v58  ;;  %v1503_v37 = vld [vmem:[#allocation11 + $0x1b8] sm:$0xff] }
 0x24d   :  { %1402 = vmatpush1.msra.mxu1 %v1016_v40  ;;  %1709 = vmatprep.subr.mxu0 %v1465_v49  ;;  %v1487_v40 = vld [vmem:[#allocation11 + $0x138] sm:$0xff] }
 0x24e   :  { %1403 = vmatprep.subr.mxu1 %v1013_v44  ;;  %1710 = vmatpush3.msra.mxu0 %v1449_v55  ;;  %v1502_v44 = vld [vmem:[#allocation11 + $0x1b0] sm:$0xff] }
 0x24f   :  { %1404 = vmatpush1.msra.mxu1 %v1012_v45  ;;  %1711 = vmatprep.subr.mxu0 %v1464_v19  ;;  %v1486_v45 = vld [vmem:[#allocation11 + $0x130] sm:$0xff] }
 0x250   :  { %1405 = vmatprep.subr.mxu1 %v1137_v50  ;;  %1712 = vmatpush3.msra.mxu0 %v1448_v20  ;;  %v1501_v50 = vld [vmem:[#allocation11 + $0x1a8] sm:$0xff] }
 0x251   :  { %1406 = vmatpush2.msra.mxu1 %v1136_v46  ;;  %v1485_v46 = vld [vmem:[#allocation11 + $0x128] sm:$0xff] }
 0x252   :  { %1407 = vmatprep.subr.mxu1 %v1133_v47  ;;  %v1500_v47 = vld [vmem:[#allocation11 + $0x1a0] sm:$0xff] }
 0x253   :  { %1408 = vmatpush2.msra.mxu1 %v1132_v51  ;;  %v1484_v51 = vld [vmem:[#allocation11 + $0x120] sm:$0xff] }
 0x254   :  { %1409 = vmatprep.subr.mxu1 %v1129_v52  ;;  %v1499_v52 = vld [vmem:[#allocation11 + $0x198] sm:$0xff] }
 0x255   :  { %1410 = vmatpush2.msra.mxu1 %v1128_v53  ;;  %v1483_v53 = vld [vmem:[#allocation11 + $0x118] sm:$0xff] }
 0x256   :  { %1411 = vmatprep.subr.mxu1 %v1125_v54  ;;  %v1498_v54 = vld [vmem:[#allocation11 + $0x190] sm:$0xff] }
 0x257   :  { %1412 = vmatpush2.msra.mxu1 %v1124_v56  ;;  %v1482_v56 = vld [vmem:[#allocation11 + $0x110] sm:$0xff] }
 0x258   :  { %1413 = vmatprep.subr.mxu1 %v1121_v57  ;;  %v1497_v57 = vld [vmem:[#allocation11 + $0x188] sm:$0xff] }
 0x259   :  { %1414 = vmatpush2.msra.mxu1 %v1120_v59  ;;  %v1481_v59 = vld [vmem:[#allocation11 + $0x108] sm:$0xff] }
 0x25a   :  { %1415 = vmatprep.subr.mxu1 %v1117_v60  ;;  %v1496_v60 = vld [vmem:[#allocation11 + $0x180] sm:$0xff] }
 0x25b   :  { %1416 = vmatpush2.msra.mxu1 %v1116_v61  ;;  %v1480_v61 = vld [vmem:[#allocation11 + $0x100] sm:$0xff] }
 0x25c   :  { %1417 = vmatprep.subr.mxu1 %v1113_v62  ;;  %v1138_v62 = vld [vmem:[%s2074_s6] sm:$0xf] }
 0x25d   :  { %1418 = vmatpush2.msra.mxu1 %v1112_v23 }
 0x25e   :  { %1419 = vmatprep.subr.mxu1 %v1109_v27  ;;  %v1143_v27 = vrot.slane %v1138_v62, %v2004_v39 }
 0x25f   :  { %1420 = vmatpush2.msra.mxu1 %v1108_v63  ;;  %v1147_v63 = vrot.slane %v1138_v62, %v2006_v41 }
 0x260   :  { %1421 = vmatprep.subr.mxu1 %v1105_v0 }
 0x261   :  { %1422 = vmatpush2.msra.mxu1 %v1104_v1 }
 0x262   :  { %1423 = vmatprep.subr.mxu1 %v1101_v2 }
 0x263   :  { %1424 = vmatpush2.msra.mxu1 %v1100_v3 }
 0x264   :  { %1425 = vmatprep.subr.mxu1 %v1097_v4 }
 0x265   :  { %1426 = vmatpush2.msra.mxu1 %v1096_v5 }
 0x266   :  { %1427 = vmatprep.subr.mxu1 %v1093_v6 }
 0x267   :  { %1428 = vmatpush2.msra.mxu1 %v1092_v7 }
 0x268   :  { %1429 = vmatprep.subr.mxu1 %v1089_v8 }
 0x269   :  { %1430 = vmatpush2.msra.mxu1 %v1088_v9 }
 0x26a   :  { %1431 = vmatprep.subr.mxu1 %v1085_v10  ;;  %v1151_v10 = vrot.slane %v1138_v62, %v2002_v38  ;;  %v1680_v38 = vld [vmem:[%s2076_s8] ss:$0 sm:$0xff] }
 0x26b   :  { %1432 = vmatpush2.msra.mxu1 %v1084_v11  ;;  %v1155_v11 = vrot.slane %v1138_v62, %v2008_v42 }
 0x26c   :  { %1433 = vmatprep.subr.mxu1 %v1081_v12 }
 0x26d   :  { %1434 = vmatpush2.msra.mxu1 %v1080_v13 }
 0x26e   :  { %1435 = vmatprep.subr.mxu1 %v1077_v14 }
 0x26f   :  { %1436 = vmatpush2.msra.mxu1 %v1076_v15 }
 0x270   :  { %1438 = vmatmul.mubr.f32.vlgmr.msra.gmra.mxu1 %v880_v48  ;;  %1716 = vmatprep.subr.mxu1 %v1511_v21  ;;  %v1494_v48 = vld [vmem:[#allocation11 + $0x170] sm:$0xff] }
 0x271   :  { %1717 = vmatpush3.msra.mxu1 %v1495_v22 }
 0x272   :  { %1718 = vmatprep.subr.mxu1 %v1510_v43 }
 0x273   :  { %1719 = vmatpush3.msra.mxu1 %v1494_v48 }
 0x274   :  { %1720 = vmatprep.subr.mxu1 %v1509_v24 }
 0x275   :  { %1721 = vmatpush3.msra.mxu1 %v1493_v25 }
 0x276   :  { %1722 = vmatprep.subr.mxu1 %v1508_v26 }
 0x277   :  { %1723 = vmatpush3.msra.mxu1 %v1492_v28 }
 0x278   :  { %1724 = vmatprep.subr.mxu1 %v1507_v29 }
 0x279   :  { %1725 = vmatpush3.msra.mxu1 %v1491_v30 }
 0x27a   :  { %1726 = vmatprep.subr.mxu1 %v1506_v31 }
 0x27b   :  { %1727 = vmatpush3.msra.mxu1 %v1490_v32 }
 0x27c   :  { %1728 = vmatprep.subr.mxu1 %v1505_v33 }
 0x27d   :  { %1729 = vmatpush3.msra.mxu1 %v1489_v34 }
 0x27e   :  { %1730 = vmatprep.subr.mxu1 %v1504_v35 }
 0x27f   :  { %1731 = vmatpush3.msra.mxu1 %v1488_v36 }
 0x280   :  { %1732 = vmatprep.subr.mxu1 %v1503_v37 }
 0x281   :  { %1733 = vmatpush3.msra.mxu1 %v1487_v40 }
 0x282   :  { %1734 = vmatprep.subr.mxu1 %v1502_v44 }
 0x283   :  { %1735 = vmatpush3.msra.mxu1 %v1486_v45 }
 0x284   :  { %1736 = vmatprep.subr.mxu1 %v1501_v50 }
 0x285   :  { %1737 = vmatpush3.msra.mxu1 %v1485_v46 }
 0x286   :  { %1738 = vmatprep.subr.mxu1 %v1500_v47 }
 0x287   :  { %1739 = vmatpush3.msra.mxu1 %v1484_v51 }
 0x288   :  { %1740 = vmatprep.subr.mxu1 %v1499_v52 }
 0x289   :  { %1741 = vmatpush3.msra.mxu1 %v1483_v53 }
 0x28a   :  { %1742 = vmatprep.subr.mxu1 %v1498_v54 }
 0x28b   :  { %1743 = vmatpush3.msra.mxu1 %v1482_v56 }
 0x28c   :  { %1744 = vmatprep.subr.mxu1 %v1497_v57 }
 0x28d   :  { %1745 = vmatpush3.msra.mxu1 %v1481_v59 }
 0x28e   :  { %1746 = vmatprep.subr.mxu1 %v1496_v60 }
 0x28f   :  { %1747 = vmatpush3.msra.mxu1 %v1480_v61 }
 0x2af   :  { %v1226_v23 = vpop.f32.mrf.mxu0 }
 0x2b0   :  { %v1227_v1 = vadd.f32 %v1226_v23, %v1143_v27 }
 0x2b1   :  { %v1228_v0 = vpop.f32.mrf.mxu0 }
 0x2b2   :  { %v1229_v3 = vadd.f32 %v1228_v0, %v1147_v63 }
 0x2ef   :  { %v1368_v9 = vpop.f32.mrf.mxu0 }
 0x2f0   :  { %v1297_v2 = vpop.f32.mrf.mxu1  ;;  %v1369_v39 = vadd.f32 %v1368_v9, %v1151_v10 }
 0x2f1   :  { %v1298_v4 = vadd.f32 %v1297_v2, %v1227_v1  ;;  %v1370_v12 = vpop.f32.mrf.mxu0 }
 0x2f2   :  { %v1299_v5 = vpop.f32.mrf.mxu1  ;;  %v1371_v41 = vadd.f32 %v1370_v12, %v1155_v11 }
 0x2f3   :  { %v1300_v6 = vadd.f32 %v1299_v5, %v1229_v3  ;;  %v1444_v8 = vmax.f32 %v1298_v4, 0.0 }
 0x2f5   :  { %v1445_v7 = vmax.f32 %v1300_v6, 0.0 }
 0x2f7   :  { %1583 = vmatprep.mubr.f32.mxu0 %v1445_v7 }
 0x2f8   :  { %1584 = vmatmul.mubr.f32.vlgmr.msra.gmra.mxu0 %v1444_v8 }
 0x330   :  { %v1439_v13 = vpop.f32.mrf.mxu1 }
 0x331   :  { %v1440_v14 = vadd.f32 %v1439_v13, %v1369_v39 }
 0x332   :  { %v1441_v15 = vpop.f32.mrf.mxu1 }
 0x333   :  { %v1442_v16 = vadd.f32 %v1441_v15, %v1371_v41  ;;  %v1446_v18 = vmax.f32 %v1440_v14, 0.0 }
 0x335   :  { %v1447_v17 = vmax.f32 %v1442_v16, 0.0 }
 0x337   :  { %1653 = vmatprep.mubr.f32.mxu1 %v1447_v17 }
 0x338   :  { %1654 = vmatmul.mubr.f32.vlgmr.msra.gmra.mxu1 %v1446_v18 }
 0x3b8   :  { %v1713_v58 = vpop.f32.mrf.mxu0 }
 0x3ba   :  { %v1714_v49 = vpop.f32.mrf.mxu0 }
 0x3bb   :  { %v1715_v55 = vadd.f32 %v1714_v49, %v1713_v58 }
 0x3bd   :  { %v1586_v20 = vadd.f32 %v1715_v55, %v1680_v38 }
 0x3f8   :  { %v1748_v19 = vpop.f32.mrf.mxu1 }
 0x3fa   :  { %v1749_v42 = vpop.f32.mrf.mxu1 }
 0x3fb   :  { %v1750_v21 = vadd.f32 %v1749_v42, %v1748_v19 }
 0x3fd   :  { %v1656_v22 = vadd.f32 %v1750_v21, %v1586_v20 }
 0x3ff   :  { %1659 = vst [vmem:[#allocation13] sm:$0xff] %v1656_v22 }
 0x400   :  { %1894 = shalt.err (!%p1891_p6)
}
 0x401   :  { %1669 = dma.vmem_to_hbm [thread:$0]  %s1667_s21, 128, %s2077_s9, [#allocation4]  }
 0x402   :  { %1911 = dma.done.wait [#allocation4], 128  }
 0x403   :  { %1912 = vsyncadd [#allocation4], 4294967168 }
 0x404   :  { %1673 = vsyncpa [#allocation3], 1 }
 0x405   :  { %1674 = vsyncpa [#allocation6], 1 }
 0x406   :  { %1675 = vsyncpa [#allocation9], 1 }
 0x407   :  { %1676 = vsyncpa [#allocation12], 1 }
 0x408   :  { %1677 = vsyncpa [#allocation4], 1 }

</bundles_post_ra>
